<compile_context>
chip_gen: v7x
topology: tpu7x:2x2x1
jax: 0.10.0
libtpu: 0.0.40
codegen_flags: <defaults>
</compile_context>

<pallas_src>
import jax
import jax.numpy as jnp
import numpy as np
from jax.experimental import pallas as pl
from jax.experimental.pallas import tpu as pltpu

# ---- small, module-consistent sizes -----------------------------------------
B = 2      # batch
T = 8      # seq_len
V = 48     # vocab_size
E = 32     # embedding_size
H = 32     # hidden_size   (num_layers=1, bidirectional=False -> num_directions=1)
PAD = 0    # padding_idx


def encoder_lstm_kernel(tok_ref,    # SMEM (B, T) int32 token ids
                        len_ref,    # VMEM (B, 1) int32 lengths
                        embw_ref,   # VMEM (V, 4H) f32  fused  emb_tbl @ W_ih
                        whh_ref,    # VMEM (H, 4H) f32
                        b_ref,      # VMEM (1, 4H) f32  (b_ih + b_hh)
                        we2d_ref,   # VMEM (H, H)  f32  encoder2decoder weight
                        be2d_ref,   # VMEM (1, H)  f32  encoder2decoder bias
                        ctx_ref,    # VMEM (B, T*H) f32 out
                        dec_ref,    # VMEM (B, H)   f32 out
                        ct_ref):    # VMEM (B, H)   f32 out
    f32 = jnp.float32

    # hoisted once: loop below is fully unrolled inside this single invocation
    w_hh = whh_ref[...]                                   # (H, 4H)
    bias = b_ref[...]                                      # (1, 4H)
    lengths = len_ref[...]                                 # (B, 1) int32

    h = jnp.zeros((B, H), f32)                             # init_state: zero h0 / c0
    c = jnp.zeros((B, H), f32)
    ctx_rows = []

    for t in range(T):
        # fused embedding + input projection: gx[b] = (emb_tbl @ W_ih)[tok[b, t]]
        # (row PAD of emb_tbl is zero, so padded tokens contribute zero, as in nn.Embedding)
        gx = jnp.concatenate(
            [embw_ref[pl.ds(tok_ref[b, t], 1), :] for b in range(B)], axis=0)   # (B, 4H)

        gates = gx + jnp.dot(h, w_hh, preferred_element_type=f32) + bias        # (B, 4H)

        # two EUP passes over the full 128-lane gate vreg, then lane slices (gate order i,f,g,o)
        sig = jax.nn.sigmoid(gates)
        tnh = jnp.tanh(gates)
        i_g = sig[:, 0 * H:1 * H]
        f_g = sig[:, 1 * H:2 * H]
        g_g = tnh[:, 2 * H:3 * H]
        o_g = sig[:, 3 * H:4 * H]

        c_new = f_g * c + i_g * g_g
        h_new = o_g * jnp.tanh(c_new)

        # pack_padded_sequence semantics: state advances only while t < length[b];
        # pad_packed_sequence zero-pads ctx past length[b].
        mask = lengths > t                                  # (B, 1) bool
        h = jnp.where(mask, h_new, h)
        c = jnp.where(mask, c_new, c)
        ctx_rows.append(jnp.where(mask, h_new, jnp.zeros_like(h_new)))

    # single lane-dense (B, T*H) = (2, 256) writeback; wrapper reshapes to (B, T, H)
    ctx_ref[...] = jnp.concatenate(ctx_rows, axis=1)

    # decoder_init = tanh(encoder2decoder(h_t)), c_t = final cell state
    dec_ref[...] = jnp.tanh(
        jnp.dot(h, we2d_ref[...], preferred_element_type=f32) + be2d_ref[...])
    ct_ref[...] = c


def encoder_lstm(tokens, lengths, params):
    """tokens: (B, T) int32 vocab ids, lengths: (B,) int32 (sorted descending)."""
    emb_tbl, w_ih, w_hh, b_lstm, w_e2d, b_e2d = params

    # fold the embedding table into the LSTM input projection (one-time weight folding)
    emb_fused = jnp.dot(emb_tbl, w_ih, preferred_element_type=jnp.float32)   # (V, 4H)

    tok = tokens.astype(jnp.int32)                     # (B, T)  -> SMEM
    len_b1 = lengths[:, None].astype(jnp.int32)        # (B, 1)  -> VMEM

    smem = pltpu.MemorySpace.SMEM
    vmem = pltpu.MemorySpace.VMEM

    out_shape = (
        jax.ShapeDtypeStruct((B, T * H), jnp.float32),   # ctx, lane-dense flat layout
        jax.ShapeDtypeStruct((B, H), jnp.float32),       # decoder_init
        jax.ShapeDtypeStruct((B, H), jnp.float32),       # c_t
    )

    ctx_flat, dec_init, c_t = pl.pallas_call(
        encoder_lstm_kernel,
        out_shape=out_shape,
        in_specs=[
            pl.BlockSpec(memory_space=smem),   # tokens
            pl.BlockSpec(memory_space=vmem),   # lengths
            pl.BlockSpec(memory_space=vmem),   # emb_fused
            pl.BlockSpec(memory_space=vmem),   # w_hh
            pl.BlockSpec(memory_space=vmem),   # bias
            pl.BlockSpec(memory_space=vmem),   # w_e2d
            pl.BlockSpec(memory_space=vmem),   # b_e2d
        ],
        out_specs=(
            pl.BlockSpec(memory_space=vmem),
            pl.BlockSpec(memory_space=vmem),
            pl.BlockSpec(memory_space=vmem),
        ),
    )(tok, len_b1, emb_fused, w_hh, b_lstm, w_e2d, b_e2d)

    ctx = ctx_flat.reshape(B, T, H)                     # (B, T, H) batch_first
    return ctx, dec_init, c_t


def make_params(key):
    ks = jax.random.split(key, 6)
    s = 0.1
    emb = s * jax.random.normal(ks[0], (V, E), jnp.float32)
    emb = emb.at[PAD].set(0.0)                                       # padding_idx row is zero
    w_ih = s * jax.random.normal(ks[1], (E, 4 * H), jnp.float32)     # pre-transposed, gates i,f,g,o
    w_hh = s * jax.random.normal(ks[2], (H, 4 * H), jnp.float32)
    b    = s * jax.random.normal(ks[3], (1, 4 * H), jnp.float32)     # b_ih + b_hh
    w_e2d = s * jax.random.normal(ks[4], (H, H), jnp.float32)        # encoder2decoder
    b_e2d = s * jax.random.normal(ks[5], (1, H), jnp.float32)
    return emb, w_ih, w_hh, b, w_e2d, b_e2d


def reference_forward(tokens, lengths, params):
    """Pure-JAX reference reproducing the PyTorch forward (dropout = identity)."""
    emb_tbl, w_ih, w_hh, b, w_e2d, b_e2d = params
    embeds = emb_tbl[tokens]                                         # (B, T, E)
    h = jnp.zeros((B, H), jnp.float32)
    c = jnp.zeros((B, H), jnp.float32)
    rows = []
    for t in range(T):
        x = embeds[:, t, :]
        gates = x @ w_ih + h @ w_hh + b
        i = jax.nn.sigmoid(gates[:, :H])
        f = jax.nn.sigmoid(gates[:, H:2 * H])
        g = jnp.tanh(gates[:, 2 * H:3 * H])
        o = jax.nn.sigmoid(gates[:, 3 * H:])
        c_new = f * c + i * g
        h_new = o * jnp.tanh(c_new)
        valid = (lengths > t).astype(jnp.float32)[:, None]
        h = valid * h_new + (1.0 - valid) * h
        c = valid * c_new + (1.0 - valid) * c
        rows.append(valid * h_new)                                   # pad_packed_sequence zero-pads
    ctx = jnp.stack(rows, axis=1)                                    # (B, T, H)
    dec_init = jnp.tanh(h @ w_e2d + b_e2d)                           # sub_out == 'tanh'
    return ctx, dec_init, c


if __name__ == "__main__":
    key = jax.random.PRNGKey(0)
    k_tok, k_par = jax.random.split(key)

    lengths = jnp.array([T, T - 2], jnp.int32)                       # sorted descending (pack req.)
    tokens = jax.random.randint(k_tok, (B, T), 1, V, jnp.int32)
    pad_mask = jnp.arange(T)[None, :] >= lengths[:, None]
    tokens = jnp.where(pad_mask, PAD, tokens)                        # pad positions -> padding_idx

    params = make_params(k_par)

    outs = encoder_lstm(tokens, lengths, params)
    outs = jax.block_until_ready(outs)

    ref = reference_forward(tokens, lengths, params)
    for o, r in zip(outs, ref):
        np.testing.assert_allclose(np.asarray(o), np.asarray(r), rtol=1e-5, atol=1e-5)

    print("KERNEL_OK")
</pallas_src>

<mosaic_0001>
module attributes {stable_mosaic.version = 11 : i64} {
  func.func @encoder_lstm_kernel(%arg0: memref<2x8xi32, #tpu.memory_space<smem>>, %arg1: memref<2x1xi32, #tpu.memory_space<vmem>>, %arg2: memref<48x128xf32, #tpu.memory_space<vmem>>, %arg3: memref<32x128xf32, #tpu.memory_space<vmem>>, %arg4: memref<1x128xf32, #tpu.memory_space<vmem>>, %arg5: memref<32x32xf32, #tpu.memory_space<vmem>>, %arg6: memref<1x32xf32, #tpu.memory_space<vmem>>, %arg7: memref<2x256xf32, #tpu.memory_space<vmem>>, %arg8: memref<2x32xf32, #tpu.memory_space<vmem>>, %arg9: memref<2x32xf32, #tpu.memory_space<vmem>>) attributes {dimension_semantics = [], scalar_prefetch = 0 : i64, scratch_operands = 0 : i64, tpu.core_type = #tpu.core_type<tc>} {
    %c0 = arith.constant 0 : index
    %c0_0 = arith.constant 0 : index
    %0 = vector.load %arg3[%c0, %c0_0] : memref<32x128xf32, #tpu.memory_space<vmem>>, vector<32x128xf32>
    %c0_1 = arith.constant 0 : index
    %c0_2 = arith.constant 0 : index
    %1 = vector.load %arg4[%c0_1, %c0_2] : memref<1x128xf32, #tpu.memory_space<vmem>>, vector<1x128xf32>
    %c0_3 = arith.constant 0 : index
    %c0_4 = arith.constant 0 : index
    %2 = vector.load %arg1[%c0_3, %c0_4] : memref<2x1xi32, #tpu.memory_space<vmem>>, vector<2x1xi32>
    %cst = arith.constant 0.000000e+00 : f32
    %3 = vector.broadcast %cst : f32 to vector<2x32xf32>
    %cst_5 = arith.constant 0.000000e+00 : f32
    %4 = vector.broadcast %cst_5 : f32 to vector<2x32xf32>
    %c0_6 = arith.constant 0 : index
    %c0_7 = arith.constant 0 : index
    %5 = memref.load %arg0[%c0_6, %c0_7] : memref<2x8xi32, #tpu.memory_space<smem>>
    %6 = arith.index_cast %5 : i32 to index
    %c0_8 = arith.constant 0 : index
    %7 = vector.load %arg2[%6, %c0_8] : memref<48x128xf32, #tpu.memory_space<vmem>>, vector<1x128xf32>
    %c1 = arith.constant 1 : index
    %c0_9 = arith.constant 0 : index
    %8 = memref.load %arg0[%c1, %c0_9] : memref<2x8xi32, #tpu.memory_space<smem>>
    %9 = arith.index_cast %8 : i32 to index
    %c0_10 = arith.constant 0 : index
    %10 = vector.load %arg2[%9, %c0_10] : memref<48x128xf32, #tpu.memory_space<vmem>>, vector<1x128xf32>
    %11 = tpu.concatenate %7, %10 in 0 : vector<1x128xf32>, vector<1x128xf32> -> vector<2x128xf32>
    %cst_11 = arith.constant dense<0.000000e+00> : vector<2x128xf32>
    %12 = tpu.matmul %3, %0, %cst_11 {dimension_numbers = #tpu.dot_dimension_numbers<[1], [0], [0], [1], [0, 0, 1, 1], [], []>} : vector<2x32xf32>, vector<32x128xf32>, vector<2x128xf32> -> vector<2x128xf32>
    %13 = arith.addf %11, %12 : vector<2x128xf32>
    %14 = vector.broadcast %1 : vector<1x128xf32> to vector<2x128xf32>
    %15 = arith.addf %13, %14 : vector<2x128xf32>
    %16 = arith.negf %15 : vector<2x128xf32>
    %17 = math.exp %16 : vector<2x128xf32>
    %cst_12 = arith.constant 1.000000e+00 : f32
    %18 = vector.broadcast %cst_12 : f32 to vector<2x128xf32>
    %19 = arith.addf %18, %17 : vector<2x128xf32>
    %20 = arith.divf %18, %19 : vector<2x128xf32>
    %21 = math.tanh %15 : vector<2x128xf32>
    %22 = vector.extract_strided_slice %20 {offsets = [0, 0], sizes = [2, 32], strides = [1, 1]} : vector<2x128xf32> to vector<2x32xf32>
    %23 = vector.extract_strided_slice %20 {offsets = [0, 32], sizes = [2, 32], strides = [1, 1]} : vector<2x128xf32> to vector<2x32xf32>
    %24 = vector.extract_strided_slice %21 {offsets = [0, 64], sizes = [2, 32], strides = [1, 1]} : vector<2x128xf32> to vector<2x32xf32>
    %25 = vector.extract_strided_slice %20 {offsets = [0, 96], sizes = [2, 32], strides = [1, 1]} : vector<2x128xf32> to vector<2x32xf32>
    %26 = arith.mulf %23, %4 : vector<2x32xf32>
    %27 = arith.mulf %22, %24 : vector<2x32xf32>
    %28 = arith.addf %26, %27 : vector<2x32xf32>
    %29 = math.tanh %28 : vector<2x32xf32>
    %30 = arith.mulf %25, %29 : vector<2x32xf32>
    %c0_i32 = arith.constant 0 : i32
    %31 = vector.broadcast %c0_i32 : i32 to vector<2x1xi32>
    %32 = arith.cmpi sgt, %2, %31 : vector<2x1xi32>
    %33 = vector.shape_cast %32 : vector<2x1xi1> to vector<2x1xi1>
    %34 = vector.broadcast %33 : vector<2x1xi1> to vector<2x32xi1>
    %35 = arith.select %34, %30, %3 : vector<2x32xi1>, vector<2x32xf32>
    %36 = vector.shape_cast %32 : vector<2x1xi1> to vector<2x1xi1>
    %37 = vector.broadcast %36 : vector<2x1xi1> to vector<2x32xi1>
    %38 = arith.select %37, %28, %4 : vector<2x32xi1>, vector<2x32xf32>
    %cst_13 = arith.constant 0.000000e+00 : f32
    %39 = vector.broadcast %cst_13 : f32 to vector<2x32xf32>
    %40 = vector.shape_cast %32 : vector<2x1xi1> to vector<2x1xi1>
    %41 = vector.broadcast %40 : vector<2x1xi1> to vector<2x32xi1>
    %42 = arith.select %41, %30, %39 : vector<2x32xi1>, vector<2x32xf32>
    %c0_14 = arith.constant 0 : index
    %c1_15 = arith.constant 1 : index
    %43 = memref.load %arg0[%c0_14, %c1_15] : memref<2x8xi32, #tpu.memory_space<smem>>
    %44 = arith.index_cast %43 : i32 to index
    %c0_16 = arith.constant 0 : index
    %45 = vector.load %arg2[%44, %c0_16] : memref<48x128xf32, #tpu.memory_space<vmem>>, vector<1x128xf32>
    %c1_17 = arith.constant 1 : index
    %c1_18 = arith.constant 1 : index
    %46 = memref.load %arg0[%c1_17, %c1_18] : memref<2x8xi32, #tpu.memory_space<smem>>
    %47 = arith.index_cast %46 : i32 to index
    %c0_19 = arith.constant 0 : index
    %48 = vector.load %arg2[%47, %c0_19] : memref<48x128xf32, #tpu.memory_space<vmem>>, vector<1x128xf32>
    %49 = tpu.concatenate %45, %48 in 0 : vector<1x128xf32>, vector<1x128xf32> -> vector<2x128xf32>
    %cst_20 = arith.constant dense<0.000000e+00> : vector<2x128xf32>
    %50 = tpu.matmul %35, %0, %cst_20 {dimension_numbers = #tpu.dot_dimension_numbers<[1], [0], [0], [1], [0, 0, 1, 1], [], []>} : vector<2x32xf32>, vector<32x128xf32>, vector<2x128xf32> -> vector<2x128xf32>
    %51 = arith.addf %49, %50 : vector<2x128xf32>
    %52 = vector.broadcast %1 : vector<1x128xf32> to vector<2x128xf32>
    %53 = arith.addf %51, %52 : vector<2x128xf32>
    %54 = arith.negf %53 : vector<2x128xf32>
    %55 = math.exp %54 : vector<2x128xf32>
    %cst_21 = arith.constant 1.000000e+00 : f32
    %56 = vector.broadcast %cst_21 : f32 to vector<2x128xf32>
    %57 = arith.addf %56, %55 : vector<2x128xf32>
    %58 = arith.divf %56, %57 : vector<2x128xf32>
    %59 = math.tanh %53 : vector<2x128xf32>
    %60 = vector.extract_strided_slice %58 {offsets = [0, 0], sizes = [2, 32], strides = [1, 1]} : vector<2x128xf32> to vector<2x32xf32>
    %61 = vector.extract_strided_slice %58 {offsets = [0, 32], sizes = [2, 32], strides = [1, 1]} : vector<2x128xf32> to vector<2x32xf32>
    %62 = vector.extract_strided_slice %59 {offsets = [0, 64], sizes = [2, 32], strides = [1, 1]} : vector<2x128xf32> to vector<2x32xf32>
    %63 = vector.extract_strided_slice %58 {offsets = [0, 96], sizes = [2, 32], strides = [1, 1]} : vector<2x128xf32> to vector<2x32xf32>
    %64 = arith.mulf %61, %38 : vector<2x32xf32>
    %65 = arith.mulf %60, %62 : vector<2x32xf32>
    %66 = arith.addf %64, %65 : vector<2x32xf32>
    %67 = math.tanh %66 : vector<2x32xf32>
    %68 = arith.mulf %63, %67 : vector<2x32xf32>
    %c1_i32 = arith.constant 1 : i32
    %69 = vector.broadcast %c1_i32 : i32 to vector<2x1xi32>
    %70 = arith.cmpi sgt, %2, %69 : vector<2x1xi32>
    %71 = vector.shape_cast %70 : vector<2x1xi1> to vector<2x1xi1>
    %72 = vector.broadcast %71 : vector<2x1xi1> to vector<2x32xi1>
    %73 = arith.select %72, %68, %35 : vector<2x32xi1>, vector<2x32xf32>
    %74 = vector.shape_cast %70 : vector<2x1xi1> to vector<2x1xi1>
    %75 = vector.broadcast %74 : vector<2x1xi1> to vector<2x32xi1>
    %76 = arith.select %75, %66, %38 : vector<2x32xi1>, vector<2x32xf32>
    %cst_22 = arith.constant 0.000000e+00 : f32
    %77 = vector.broadcast %cst_22 : f32 to vector<2x32xf32>
    %78 = vector.shape_cast %70 : vector<2x1xi1> to vector<2x1xi1>
    %79 = vector.broadcast %78 : vector<2x1xi1> to vector<2x32xi1>
    %80 = arith.select %79, %68, %77 : vector<2x32xi1>, vector<2x32xf32>
    %c0_23 = arith.constant 0 : index
    %c2 = arith.constant 2 : index
    %81 = memref.load %arg0[%c0_23, %c2] : memref<2x8xi32, #tpu.memory_space<smem>>
    %82 = arith.index_cast %81 : i32 to index
    %c0_24 = arith.constant 0 : index
    %83 = vector.load %arg2[%82, %c0_24] : memref<48x128xf32, #tpu.memory_space<vmem>>, vector<1x128xf32>
    %c1_25 = arith.constant 1 : index
    %c2_26 = arith.constant 2 : index
    %84 = memref.load %arg0[%c1_25, %c2_26] : memref<2x8xi32, #tpu.memory_space<smem>>
    %85 = arith.index_cast %84 : i32 to index
    %c0_27 = arith.constant 0 : index
    %86 = vector.load %arg2[%85, %c0_27] : memref<48x128xf32, #tpu.memory_space<vmem>>, vector<1x128xf32>
    %87 = tpu.concatenate %83, %86 in 0 : vector<1x128xf32>, vector<1x128xf32> -> vector<2x128xf32>
    %cst_28 = arith.constant dense<0.000000e+00> : vector<2x128xf32>
    %88 = tpu.matmul %73, %0, %cst_28 {dimension_numbers = #tpu.dot_dimension_numbers<[1], [0], [0], [1], [0, 0, 1, 1], [], []>} : vector<2x32xf32>, vector<32x128xf32>, vector<2x128xf32> -> vector<2x128xf32>
    %89 = arith.addf %87, %88 : vector<2x128xf32>
    %90 = vector.broadcast %1 : vector<1x128xf32> to vector<2x128xf32>
    %91 = arith.addf %89, %90 : vector<2x128xf32>
    %92 = arith.negf %91 : vector<2x128xf32>
    %93 = math.exp %92 : vector<2x128xf32>
    %cst_29 = arith.constant 1.000000e+00 : f32
    %94 = vector.broadcast %cst_29 : f32 to vector<2x128xf32>
    %95 = arith.addf %94, %93 : vector<2x128xf32>
    %96 = arith.divf %94, %95 : vector<2x128xf32>
    %97 = math.tanh %91 : vector<2x128xf32>
    %98 = vector.extract_strided_slice %96 {offsets = [0, 0], sizes = [2, 32], strides = [1, 1]} : vector<2x128xf32> to vector<2x32xf32>
    %99 = vector.extract_strided_slice %96 {offsets = [0, 32], sizes = [2, 32], strides = [1, 1]} : vector<2x128xf32> to vector<2x32xf32>
    %100 = vector.extract_strided_slice %97 {offsets = [0, 64], sizes = [2, 32], strides = [1, 1]} : vector<2x128xf32> to vector<2x32xf32>
    %101 = vector.extract_strided_slice %96 {offsets = [0, 96], sizes = [2, 32], strides = [1, 1]} : vector<2x128xf32> to vector<2x32xf32>
    %102 = arith.mulf %99, %76 : vector<2x32xf32>
    %103 = arith.mulf %98, %100 : vector<2x32xf32>
    %104 = arith.addf %102, %103 : vector<2x32xf32>
    %105 = math.tanh %104 : vector<2x32xf32>
    %106 = arith.mulf %101, %105 : vector<2x32xf32>
    %c2_i32 = arith.constant 2 : i32
    %107 = vector.broadcast %c2_i32 : i32 to vector<2x1xi32>
    %108 = arith.cmpi sgt, %2, %107 : vector<2x1xi32>
    %109 = vector.shape_cast %108 : vector<2x1xi1> to vector<2x1xi1>
    %110 = vector.broadcast %109 : vector<2x1xi1> to vector<2x32xi1>
    %111 = arith.select %110, %106, %73 : vector<2x32xi1>, vector<2x32xf32>
    %112 = vector.shape_cast %108 : vector<2x1xi1> to vector<2x1xi1>
    %113 = vector.broadcast %112 : vector<2x1xi1> to vector<2x32xi1>
    %114 = arith.select %113, %104, %76 : vector<2x32xi1>, vector<2x32xf32>
    %cst_30 = arith.constant 0.000000e+00 : f32
    %115 = vector.broadcast %cst_30 : f32 to vector<2x32xf32>
    %116 = vector.shape_cast %108 : vector<2x1xi1> to vector<2x1xi1>
    %117 = vector.broadcast %116 : vector<2x1xi1> to vector<2x32xi1>
    %118 = arith.select %117, %106, %115 : vector<2x32xi1>, vector<2x32xf32>
    %c0_31 = arith.constant 0 : index
    %c3 = arith.constant 3 : index
    %119 = memref.load %arg0[%c0_31, %c3] : memref<2x8xi32, #tpu.memory_space<smem>>
    %120 = arith.index_cast %119 : i32 to index
    %c0_32 = arith.constant 0 : index
    %121 = vector.load %arg2[%120, %c0_32] : memref<48x128xf32, #tpu.memory_space<vmem>>, vector<1x128xf32>
    %c1_33 = arith.constant 1 : index
    %c3_34 = arith.constant 3 : index
    %122 = memref.load %arg0[%c1_33, %c3_34] : memref<2x8xi32, #tpu.memory_space<smem>>
    %123 = arith.index_cast %122 : i32 to index
    %c0_35 = arith.constant 0 : index
    %124 = vector.load %arg2[%123, %c0_35] : memref<48x128xf32, #tpu.memory_space<vmem>>, vector<1x128xf32>
    %125 = tpu.concatenate %121, %124 in 0 : vector<1x128xf32>, vector<1x128xf32> -> vector<2x128xf32>
    %cst_36 = arith.constant dense<0.000000e+00> : vector<2x128xf32>
    %126 = tpu.matmul %111, %0, %cst_36 {dimension_numbers = #tpu.dot_dimension_numbers<[1], [0], [0], [1], [0, 0, 1, 1], [], []>} : vector<2x32xf32>, vector<32x128xf32>, vector<2x128xf32> -> vector<2x128xf32>
    %127 = arith.addf %125, %126 : vector<2x128xf32>
    %128 = vector.broadcast %1 : vector<1x128xf32> to vector<2x128xf32>
    %129 = arith.addf %127, %128 : vector<2x128xf32>
    %130 = arith.negf %129 : vector<2x128xf32>
    %131 = math.exp %130 : vector<2x128xf32>
    %cst_37 = arith.constant 1.000000e+00 : f32
    %132 = vector.broadcast %cst_37 : f32 to vector<2x128xf32>
    %133 = arith.addf %132, %131 : vector<2x128xf32>
    %134 = arith.divf %132, %133 : vector<2x128xf32>
    %135 = math.tanh %129 : vector<2x128xf32>
    %136 = vector.extract_strided_slice %134 {offsets = [0, 0], sizes = [2, 32], strides = [1, 1]} : vector<2x128xf32> to vector<2x32xf32>
    %137 = vector.extract_strided_slice %134 {offsets = [0, 32], sizes = [2, 32], strides = [1, 1]} : vector<2x128xf32> to vector<2x32xf32>
    %138 = vector.extract_strided_slice %135 {offsets = [0, 64], sizes = [2, 32], strides = [1, 1]} : vector<2x128xf32> to vector<2x32xf32>
    %139 = vector.extract_strided_slice %134 {offsets = [0, 96], sizes = [2, 32], strides = [1, 1]} : vector<2x128xf32> to vector<2x32xf32>
    %140 = arith.mulf %137, %114 : vector<2x32xf32>
    %141 = arith.mulf %136, %138 : vector<2x32xf32>
    %142 = arith.addf %140, %141 : vector<2x32xf32>
    %143 = math.tanh %142 : vector<2x32xf32>
    %144 = arith.mulf %139, %143 : vector<2x32xf32>
    %c3_i32 = arith.constant 3 : i32
    %145 = vector.broadcast %c3_i32 : i32 to vector<2x1xi32>
    %146 = arith.cmpi sgt, %2, %145 : vector<2x1xi32>
    %147 = vector.shape_cast %146 : vector<2x1xi1> to vector<2x1xi1>
    %148 = vector.broadcast %147 : vector<2x1xi1> to vector<2x32xi1>
    %149 = arith.select %148, %144, %111 : vector<2x32xi1>, vector<2x32xf32>
    %150 = vector.shape_cast %146 : vector<2x1xi1> to vector<2x1xi1>
    %151 = vector.broadcast %150 : vector<2x1xi1> to vector<2x32xi1>
    %152 = arith.select %151, %142, %114 : vector<2x32xi1>, vector<2x32xf32>
    %cst_38 = arith.constant 0.000000e+00 : f32
    %153 = vector.broadcast %cst_38 : f32 to vector<2x32xf32>
    %154 = vector.shape_cast %146 : vector<2x1xi1> to vector<2x1xi1>
    %155 = vector.broadcast %154 : vector<2x1xi1> to vector<2x32xi1>
    %156 = arith.select %155, %144, %153 : vector<2x32xi1>, vector<2x32xf32>
    %c0_39 = arith.constant 0 : index
    %c4 = arith.constant 4 : index
    %157 = memref.load %arg0[%c0_39, %c4] : memref<2x8xi32, #tpu.memory_space<smem>>
    %158 = arith.index_cast %157 : i32 to index
    %c0_40 = arith.constant 0 : index
    %159 = vector.load %arg2[%158, %c0_40] : memref<48x128xf32, #tpu.memory_space<vmem>>, vector<1x128xf32>
    %c1_41 = arith.constant 1 : index
    %c4_42 = arith.constant 4 : index
    %160 = memref.load %arg0[%c1_41, %c4_42] : memref<2x8xi32, #tpu.memory_space<smem>>
    %161 = arith.index_cast %160 : i32 to index
    %c0_43 = arith.constant 0 : index
    %162 = vector.load %arg2[%161, %c0_43] : memref<48x128xf32, #tpu.memory_space<vmem>>, vector<1x128xf32>
    %163 = tpu.concatenate %159, %162 in 0 : vector<1x128xf32>, vector<1x128xf32> -> vector<2x128xf32>
    %cst_44 = arith.constant dense<0.000000e+00> : vector<2x128xf32>
    %164 = tpu.matmul %149, %0, %cst_44 {dimension_numbers = #tpu.dot_dimension_numbers<[1], [0], [0], [1], [0, 0, 1, 1], [], []>} : vector<2x32xf32>, vector<32x128xf32>, vector<2x128xf32> -> vector<2x128xf32>
    %165 = arith.addf %163, %164 : vector<2x128xf32>
    %166 = vector.broadcast %1 : vector<1x128xf32> to vector<2x128xf32>
    %167 = arith.addf %165, %166 : vector<2x128xf32>
    %168 = arith.negf %167 : vector<2x128xf32>
    %169 = math.exp %168 : vector<2x128xf32>
    %cst_45 = arith.constant 1.000000e+00 : f32
    %170 = vector.broadcast %cst_45 : f32 to vector<2x128xf32>
    %171 = arith.addf %170, %169 : vector<2x128xf32>
    %172 = arith.divf %170, %171 : vector<2x128xf32>
    %173 = math.tanh %167 : vector<2x128xf32>
    %174 = vector.extract_strided_slice %172 {offsets = [0, 0], sizes = [2, 32], strides = [1, 1]} : vector<2x128xf32> to vector<2x32xf32>
    %175 = vector.extract_strided_slice %172 {offsets = [0, 32], sizes = [2, 32], strides = [1, 1]} : vector<2x128xf32> to vector<2x32xf32>
    %176 = vector.extract_strided_slice %173 {offsets = [0, 64], sizes = [2, 32], strides = [1, 1]} : vector<2x128xf32> to vector<2x32xf32>
    %177 = vector.extract_strided_slice %172 {offsets = [0, 96], sizes = [2, 32], strides = [1, 1]} : vector<2x128xf32> to vector<2x32xf32>
    %178 = arith.mulf %175, %152 : vector<2x32xf32>
    %179 = arith.mulf %174, %176 : vector<2x32xf32>
    %180 = arith.addf %178, %179 : vector<2x32xf32>
    %181 = math.tanh %180 : vector<2x32xf32>
    %182 = arith.mulf %177, %181 : vector<2x32xf32>
    %c4_i32 = arith.constant 4 : i32
    %183 = vector.broadcast %c4_i32 : i32 to vector<2x1xi32>
    %184 = arith.cmpi sgt, %2, %183 : vector<2x1xi32>
    %185 = vector.shape_cast %184 : vector<2x1xi1> to vector<2x1xi1>
    %186 = vector.broadcast %185 : vector<2x1xi1> to vector<2x32xi1>
    %187 = arith.select %186, %182, %149 : vector<2x32xi1>, vector<2x32xf32>
    %188 = vector.shape_cast %184 : vector<2x1xi1> to vector<2x1xi1>
    %189 = vector.broadcast %188 : vector<2x1xi1> to vector<2x32xi1>
    %190 = arith.select %189, %180, %152 : vector<2x32xi1>, vector<2x32xf32>
    %cst_46 = arith.constant 0.000000e+00 : f32
    %191 = vector.broadcast %cst_46 : f32 to vector<2x32xf32>
    %192 = vector.shape_cast %184 : vector<2x1xi1> to vector<2x1xi1>
    %193 = vector.broadcast %192 : vector<2x1xi1> to vector<2x32xi1>
    %194 = arith.select %193, %182, %191 : vector<2x32xi1>, vector<2x32xf32>
    %c0_47 = arith.constant 0 : index
    %c5 = arith.constant 5 : index
    %195 = memref.load %arg0[%c0_47, %c5] : memref<2x8xi32, #tpu.memory_space<smem>>
    %196 = arith.index_cast %195 : i32 to index
    %c0_48 = arith.constant 0 : index
    %197 = vector.load %arg2[%196, %c0_48] : memref<48x128xf32, #tpu.memory_space<vmem>>, vector<1x128xf32>
    %c1_49 = arith.constant 1 : index
    %c5_50 = arith.constant 5 : index
    %198 = memref.load %arg0[%c1_49, %c5_50] : memref<2x8xi32, #tpu.memory_space<smem>>
    %199 = arith.index_cast %198 : i32 to index
    %c0_51 = arith.constant 0 : index
    %200 = vector.load %arg2[%199, %c0_51] : memref<48x128xf32, #tpu.memory_space<vmem>>, vector<1x128xf32>
    %201 = tpu.concatenate %197, %200 in 0 : vector<1x128xf32>, vector<1x128xf32> -> vector<2x128xf32>
    %cst_52 = arith.constant dense<0.000000e+00> : vector<2x128xf32>
    %202 = tpu.matmul %187, %0, %cst_52 {dimension_numbers = #tpu.dot_dimension_numbers<[1], [0], [0], [1], [0, 0, 1, 1], [], []>} : vector<2x32xf32>, vector<32x128xf32>, vector<2x128xf32> -> vector<2x128xf32>
    %203 = arith.addf %201, %202 : vector<2x128xf32>
    %204 = vector.broadcast %1 : vector<1x128xf32> to vector<2x128xf32>
    %205 = arith.addf %203, %204 : vector<2x128xf32>
    %206 = arith.negf %205 : vector<2x128xf32>
    %207 = math.exp %206 : vector<2x128xf32>
    %cst_53 = arith.constant 1.000000e+00 : f32
    %208 = vector.broadcast %cst_53 : f32 to vector<2x128xf32>
    %209 = arith.addf %208, %207 : vector<2x128xf32>
    %210 = arith.divf %208, %209 : vector<2x128xf32>
    %211 = math.tanh %205 : vector<2x128xf32>
    %212 = vector.extract_strided_slice %210 {offsets = [0, 0], sizes = [2, 32], strides = [1, 1]} : vector<2x128xf32> to vector<2x32xf32>
    %213 = vector.extract_strided_slice %210 {offsets = [0, 32], sizes = [2, 32], strides = [1, 1]} : vector<2x128xf32> to vector<2x32xf32>
    %214 = vector.extract_strided_slice %211 {offsets = [0, 64], sizes = [2, 32], strides = [1, 1]} : vector<2x128xf32> to vector<2x32xf32>
    %215 = vector.extract_strided_slice %210 {offsets = [0, 96], sizes = [2, 32], strides = [1, 1]} : vector<2x128xf32> to vector<2x32xf32>
    %216 = arith.mulf %213, %190 : vector<2x32xf32>
    %217 = arith.mulf %212, %214 : vector<2x32xf32>
    %218 = arith.addf %216, %217 : vector<2x32xf32>
    %219 = math.tanh %218 : vector<2x32xf32>
    %220 = arith.mulf %215, %219 : vector<2x32xf32>
    %c5_i32 = arith.constant 5 : i32
    %221 = vector.broadcast %c5_i32 : i32 to vector<2x1xi32>
    %222 = arith.cmpi sgt, %2, %221 : vector<2x1xi32>
    %223 = vector.shape_cast %222 : vector<2x1xi1> to vector<2x1xi1>
    %224 = vector.broadcast %223 : vector<2x1xi1> to vector<2x32xi1>
    %225 = arith.select %224, %220, %187 : vector<2x32xi1>, vector<2x32xf32>
    %226 = vector.shape_cast %222 : vector<2x1xi1> to vector<2x1xi1>
    %227 = vector.broadcast %226 : vector<2x1xi1> to vector<2x32xi1>
    %228 = arith.select %227, %218, %190 : vector<2x32xi1>, vector<2x32xf32>
    %cst_54 = arith.constant 0.000000e+00 : f32
    %229 = vector.broadcast %cst_54 : f32 to vector<2x32xf32>
    %230 = vector.shape_cast %222 : vector<2x1xi1> to vector<2x1xi1>
    %231 = vector.broadcast %230 : vector<2x1xi1> to vector<2x32xi1>
    %232 = arith.select %231, %220, %229 : vector<2x32xi1>, vector<2x32xf32>
    %c0_55 = arith.constant 0 : index
    %c6 = arith.constant 6 : index
    %233 = memref.load %arg0[%c0_55, %c6] : memref<2x8xi32, #tpu.memory_space<smem>>
    %234 = arith.index_cast %233 : i32 to index
    %c0_56 = arith.constant 0 : index
    %235 = vector.load %arg2[%234, %c0_56] : memref<48x128xf32, #tpu.memory_space<vmem>>, vector<1x128xf32>
    %c1_57 = arith.constant 1 : index
    %c6_58 = arith.constant 6 : index
    %236 = memref.load %arg0[%c1_57, %c6_58] : memref<2x8xi32, #tpu.memory_space<smem>>
    %237 = arith.index_cast %236 : i32 to index
    %c0_59 = arith.constant 0 : index
    %238 = vector.load %arg2[%237, %c0_59] : memref<48x128xf32, #tpu.memory_space<vmem>>, vector<1x128xf32>
    %239 = tpu.concatenate %235, %238 in 0 : vector<1x128xf32>, vector<1x128xf32> -> vector<2x128xf32>
    %cst_60 = arith.constant dense<0.000000e+00> : vector<2x128xf32>
    %240 = tpu.matmul %225, %0, %cst_60 {dimension_numbers = #tpu.dot_dimension_numbers<[1], [0], [0], [1], [0, 0, 1, 1], [], []>} : vector<2x32xf32>, vector<32x128xf32>, vector<2x128xf32> -> vector<2x128xf32>
    %241 = arith.addf %239, %240 : vector<2x128xf32>
    %242 = vector.broadcast %1 : vector<1x128xf32> to vector<2x128xf32>
    %243 = arith.addf %241, %242 : vector<2x128xf32>
    %244 = arith.negf %243 : vector<2x128xf32>
    %245 = math.exp %244 : vector<2x128xf32>
    %cst_61 = arith.constant 1.000000e+00 : f32
    %246 = vector.broadcast %cst_61 : f32 to vector<2x128xf32>
    %247 = arith.addf %246, %245 : vector<2x128xf32>
    %248 = arith.divf %246, %247 : vector<2x128xf32>
    %249 = math.tanh %243 : vector<2x128xf32>
    %250 = vector.extract_strided_slice %248 {offsets = [0, 0], sizes = [2, 32], strides = [1, 1]} : vector<2x128xf32> to vector<2x32xf32>
    %251 = vector.extract_strided_slice %248 {offsets = [0, 32], sizes = [2, 32], strides = [1, 1]} : vector<2x128xf32> to vector<2x32xf32>
    %252 = vector.extract_strided_slice %249 {offsets = [0, 64], sizes = [2, 32], strides = [1, 1]} : vector<2x128xf32> to vector<2x32xf32>
    %253 = vector.extract_strided_slice %248 {offsets = [0, 96], sizes = [2, 32], strides = [1, 1]} : vector<2x128xf32> to vector<2x32xf32>
    %254 = arith.mulf %251, %228 : vector<2x32xf32>
    %255 = arith.mulf %250, %252 : vector<2x32xf32>
    %256 = arith.addf %254, %255 : vector<2x32xf32>
    %257 = math.tanh %256 : vector<2x32xf32>
    %258 = arith.mulf %253, %257 : vector<2x32xf32>
    %c6_i32 = arith.constant 6 : i32
    %259 = vector.broadcast %c6_i32 : i32 to vector<2x1xi32>
    %260 = arith.cmpi sgt, %2, %259 : vector<2x1xi32>
    %261 = vector.shape_cast %260 : vector<2x1xi1> to vector<2x1xi1>
    %262 = vector.broadcast %261 : vector<2x1xi1> to vector<2x32xi1>
    %263 = arith.select %262, %258, %225 : vector<2x32xi1>, vector<2x32xf32>
    %264 = vector.shape_cast %260 : vector<2x1xi1> to vector<2x1xi1>
    %265 = vector.broadcast %264 : vector<2x1xi1> to vector<2x32xi1>
    %266 = arith.select %265, %256, %228 : vector<2x32xi1>, vector<2x32xf32>
    %cst_62 = arith.constant 0.000000e+00 : f32
    %267 = vector.broadcast %cst_62 : f32 to vector<2x32xf32>
    %268 = vector.shape_cast %260 : vector<2x1xi1> to vector<2x1xi1>
    %269 = vector.broadcast %268 : vector<2x1xi1> to vector<2x32xi1>
    %270 = arith.select %269, %258, %267 : vector<2x32xi1>, vector<2x32xf32>
    %c0_63 = arith.constant 0 : index
    %c7 = arith.constant 7 : index
    %271 = memref.load %arg0[%c0_63, %c7] : memref<2x8xi32, #tpu.memory_space<smem>>
    %272 = arith.index_cast %271 : i32 to index
    %c0_64 = arith.constant 0 : index
    %273 = vector.load %arg2[%272, %c0_64] : memref<48x128xf32, #tpu.memory_space<vmem>>, vector<1x128xf32>
    %c1_65 = arith.constant 1 : index
    %c7_66 = arith.constant 7 : index
    %274 = memref.load %arg0[%c1_65, %c7_66] : memref<2x8xi32, #tpu.memory_space<smem>>
    %275 = arith.index_cast %274 : i32 to index
    %c0_67 = arith.constant 0 : index
    %276 = vector.load %arg2[%275, %c0_67] : memref<48x128xf32, #tpu.memory_space<vmem>>, vector<1x128xf32>
    %277 = tpu.concatenate %273, %276 in 0 : vector<1x128xf32>, vector<1x128xf32> -> vector<2x128xf32>
    %cst_68 = arith.constant dense<0.000000e+00> : vector<2x128xf32>
    %278 = tpu.matmul %263, %0, %cst_68 {dimension_numbers = #tpu.dot_dimension_numbers<[1], [0], [0], [1], [0, 0, 1, 1], [], []>} : vector<2x32xf32>, vector<32x128xf32>, vector<2x128xf32> -> vector<2x128xf32>
    %279 = arith.addf %277, %278 : vector<2x128xf32>
    %280 = vector.broadcast %1 : vector<1x128xf32> to vector<2x128xf32>
    %281 = arith.addf %279, %280 : vector<2x128xf32>
    %282 = arith.negf %281 : vector<2x128xf32>
    %283 = math.exp %282 : vector<2x128xf32>
    %cst_69 = arith.constant 1.000000e+00 : f32
    %284 = vector.broadcast %cst_69 : f32 to vector<2x128xf32>
    %285 = arith.addf %284, %283 : vector<2x128xf32>
    %286 = arith.divf %284, %285 : vector<2x128xf32>
    %287 = math.tanh %281 : vector<2x128xf32>
    %288 = vector.extract_strided_slice %286 {offsets = [0, 0], sizes = [2, 32], strides = [1, 1]} : vector<2x128xf32> to vector<2x32xf32>
    %289 = vector.extract_strided_slice %286 {offsets = [0, 32], sizes = [2, 32], strides = [1, 1]} : vector<2x128xf32> to vector<2x32xf32>
    %290 = vector.extract_strided_slice %287 {offsets = [0, 64], sizes = [2, 32], strides = [1, 1]} : vector<2x128xf32> to vector<2x32xf32>
    %291 = vector.extract_strided_slice %286 {offsets = [0, 96], sizes = [2, 32], strides = [1, 1]} : vector<2x128xf32> to vector<2x32xf32>
    %292 = arith.mulf %289, %266 : vector<2x32xf32>
    %293 = arith.mulf %288, %290 : vector<2x32xf32>
    %294 = arith.addf %292, %293 : vector<2x32xf32>
    %295 = math.tanh %294 : vector<2x32xf32>
    %296 = arith.mulf %291, %295 : vector<2x32xf32>
    %c7_i32 = arith.constant 7 : i32
    %297 = vector.broadcast %c7_i32 : i32 to vector<2x1xi32>
    %298 = arith.cmpi sgt, %2, %297 : vector<2x1xi32>
    %299 = vector.shape_cast %298 : vector<2x1xi1> to vector<2x1xi1>
    %300 = vector.broadcast %299 : vector<2x1xi1> to vector<2x32xi1>
    %301 = arith.select %300, %296, %263 : vector<2x32xi1>, vector<2x32xf32>
    %302 = vector.shape_cast %298 : vector<2x1xi1> to vector<2x1xi1>
    %303 = vector.broadcast %302 : vector<2x1xi1> to vector<2x32xi1>
    %304 = arith.select %303, %294, %266 : vector<2x32xi1>, vector<2x32xf32>
    %cst_70 = arith.constant 0.000000e+00 : f32
    %305 = vector.broadcast %cst_70 : f32 to vector<2x32xf32>
    %306 = vector.shape_cast %298 : vector<2x1xi1> to vector<2x1xi1>
    %307 = vector.broadcast %306 : vector<2x1xi1> to vector<2x32xi1>
    %308 = arith.select %307, %296, %305 : vector<2x32xi1>, vector<2x32xf32>
    %309 = tpu.concatenate %42, %80, %118, %156, %194, %232, %270, %308 in 1 : vector<2x32xf32>, vector<2x32xf32>, vector<2x32xf32>, vector<2x32xf32>, vector<2x32xf32>, vector<2x32xf32>, vector<2x32xf32>, vector<2x32xf32> -> vector<2x256xf32>
    %c0_71 = arith.constant 0 : index
    %c0_72 = arith.constant 0 : index
    %310 = vector.load %arg7[%c0_71, %c0_72] : memref<2x256xf32, #tpu.memory_space<vmem>>, vector<2x256xf32>
    tpu.vector_store %arg7[%c0_71, %c0_72], %309 {strides = array<i32>} : memref<2x256xf32, #tpu.memory_space<vmem>>, vector<2x256xf32>,
    %c0_73 = arith.constant 0 : index
    %c0_74 = arith.constant 0 : index
    %311 = vector.load %arg5[%c0_73, %c0_74] : memref<32x32xf32, #tpu.memory_space<vmem>>, vector<32x32xf32>
    %cst_75 = arith.constant dense<0.000000e+00> : vector<2x32xf32>
    %312 = tpu.matmul %301, %311, %cst_75 {dimension_numbers = #tpu.dot_dimension_numbers<[1], [0], [0], [1], [0, 0, 1, 1], [], []>} : vector<2x32xf32>, vector<32x32xf32>, vector<2x32xf32> -> vector<2x32xf32>
    %c0_76 = arith.constant 0 : index
    %c0_77 = arith.constant 0 : index
    %313 = vector.load %arg6[%c0_76, %c0_77] : memref<1x32xf32, #tpu.memory_space<vmem>>, vector<1x32xf32>
    %314 = vector.broadcast %313 : vector<1x32xf32> to vector<2x32xf32>
    %315 = arith.addf %312, %314 : vector<2x32xf32>
    %316 = math.tanh %315 : vector<2x32xf32>
    %c0_78 = arith.constant 0 : index
    %c0_79 = arith.constant 0 : index
    %317 = vector.load %arg8[%c0_78, %c0_79] : memref<2x32xf32, #tpu.memory_space<vmem>>, vector<2x32xf32>
    tpu.vector_store %arg8[%c0_78, %c0_79], %316 {strides = array<i32>} : memref<2x32xf32, #tpu.memory_space<vmem>>, vector<2x32xf32>,
    %c0_80 = arith.constant 0 : index
    %c0_81 = arith.constant 0 : index
    %318 = vector.load %arg9[%c0_80, %c0_81] : memref<2x32xf32, #tpu.memory_space<vmem>>, vector<2x32xf32>
    tpu.vector_store %arg9[%c0_80, %c0_81], %304 {strides = array<i32>} : memref<2x32xf32, #tpu.memory_space<vmem>>, vector<2x32xf32>,
    return
  }
}

</mosaic_0001>

<bundles_post_ra>
// kernel: tpu_custom_call.1
= control target key start
LH: loop header
LB: loop body
LE: loop exit
PB: predicated region body
PF: predicated region fallthrough
CT: control target
= control target key end

     0   :  { %15 = vsyncpa [#allocation5], 0  ;;  %s2106_s0 = inlined_call_operand.vmem [shape: s32[2,8], index: 0, kind: input, shape index: {}]   ;;  %s2107_s1 = inlined_call_operand.vmem [shape: s32[2,1], index: 1, kind: input, shape index: {}]   ;;  %s2108_s2 = inlined_call_operand.hbm [shape: f32[48,128], index: 2, kind: input, shape index: {}]   ;;  %s2109_s3 = inlined_call_operand.hbm [shape: f32[32,128], index: 3, kind: input, shape index: {}]   ;;  %s2110_s4 = inlined_call_operand.vmem [shape: f32[1,128], index: 4, kind: input, shape index: {}]   ;;  %s2111_s5 = inlined_call_operand.hbm [shape: f32[32,32], index: 5, kind: input, shape index: {}]   ;;  %s2112_s6 = inlined_call_operand.vmem [shape: f32[1,32], index: 6, kind: input, shape index: {}]   ;;  %s2113_s7 = inlined_call_operand.hbm [shape: f32[2,256], index: 7, kind: output, shape index: {0}]   ;;  %s2114_s8 = inlined_call_operand.hbm [shape: f32[2,32], index: 8, kind: output, shape index: {1}]   ;;  %s2115_s9 = inlined_call_operand.hbm [shape: f32[2,32], index: 9, kind: output, shape index: {2}]  }
   0x1   :  { %16 = vsyncpa [#allocation3], 0 }
   0x2   :  { %17 = vsyncpa [#allocation8], 0 }
   0x3   :  { %18 = vsyncpa [#allocation4], 0 }
   0x4   :  { %19 = vsyncpa [#allocation12], 0  ;;  %s26_s11 = sshll.u32 %s2106_s0, 4  ;;  %s1721_s12 = smov [#allocation7]   ;;  %s27_s11 = int_to_ptr.vmem [resolvable:$true] %s26_s11 }
   0x5   :  { %s49_s13 = sshll.u32 %s1721_s12, 4  ;;  %s1567_s16 = scalar_lea.hbm %s2109_s3, 512  ;;  %s50_s13 = int_to_ptr.vmem [resolvable:$true] %s49_s13 }
   0x6   :  { %p1568_p0 = scmp.ne.s32.totalorder %s2109_s3, %s1567_s16  ;;  %p1571_p1 = scmp.lt.u32.totalorder %s1567_s16, %s2109_s3 }
   0x8   :  { %p1573_p2 = pnand %p1571_p1, %p1568_p0 }
   0xa   :  { %1576 = shalt.err (!%p1573_p2)
}
   0xb   :  { %s1577_s21 = scalar_lea.vmem %s50_s13, 512  ;;  %p1582_p4 = scmp.lt.s32.totalorder %s50_s13, %s50_s13 }
   0xc   :  { %p1578_p3 = scmp.ne.s32.totalorder %s50_s13, %s1577_s21  ;;  %p1583_p5 = scmp.lt.s32.totalorder %s1577_s21, %s1577_s21 }
   0xe   :  { %p1584_p6 = por %p1583_p5, %p1582_p4 }
  0x10   :  { %p1585_p7 = pnand %p1584_p6, %p1578_p3 }
  0x12   :  { %1588 = shalt.err (!%p1585_p7)
}
  0x13   :  { %s1722_s0 = smov 128   ;;  %s1723_s22 = smov 8  }
  0x14   :  { %55 = dma.hbm_to_vmem [thread:$0]  %s2109_s3, 512, %s50_s13, [#allocation8], %s1722_s0, %s1722_s0, %s1723_s22  }
  0x15   :  { %s1589_s25 = scalar_lea.vmem %s27_s11, 32  ;;  %p1594_p9 = scmp.lt.s32.totalorder %s27_s11, %s27_s11 }
  0x16   :  { %p1590_p8 = scmp.ne.s32.totalorder %s27_s11, %s1589_s25  ;;  %p1595_p10 = scmp.lt.s32.totalorder %s1589_s25, %s1589_s25 }
  0x18   :  { %p1596_p11 = por %p1595_p10, %p1594_p9 }
  0x1a   :  { %p1597_p12 = pnand %p1596_p11, %p1590_p8 }
  0x1c   :  { %1600 = shalt.err (!%p1597_p12)
}
  0x1d   :  { %s1724_s26 = smov [#allocation2]   ;;  %s1725_s27 = smov [#allocation6]  }
  0x1e   :  { %29 = dma.vmem_to_smem %s27_s11, 32, %s1724_s26, [#allocation5]  }
  0x1f   :  { %s37_s28 = sshll.u32 %s1725_s27, 4  ;;  %s1726_s29 = smov [#allocation9]   ;;  %s38_s28 = int_to_ptr.vmem [resolvable:$true] %s37_s28 }
  0x20   :  { %s63_s30 = sshll.u32 %s1726_s29, 4  ;;  %s1601_s3 = scalar_lea.hbm %s2108_s2, 768  ;;  %s1805_s30 = int_to_ptr.vmem [resolvable:$true] %s63_s30 }
  0x21   :  { %p1602_p13 = scmp.ne.s32.totalorder %s2108_s2, %s1601_s3  ;;  %p1605_p0 = scmp.lt.u32.totalorder %s1601_s3, %s2108_s2 }
  0x23   :  { %p1607_p1 = pnand %p1605_p0, %p1602_p13 }
  0x25   :  { %1610 = shalt.err (!%p1607_p1)
}
  0x26   :  { %s1611_s11 = scalar_lea.vmem %s38_s28, 768  ;;  %p1616_p3 = scmp.lt.s32.totalorder %s38_s28, %s38_s28 }
  0x27   :  { %p1612_p2 = scmp.ne.s32.totalorder %s38_s28, %s1611_s11  ;;  %p1617_p4 = scmp.lt.s32.totalorder %s1611_s11, %s1611_s11 }
  0x29   :  { %p1618_p5 = por %p1617_p4, %p1616_p3 }
  0x2b   :  { %p1619_p6 = pnand %p1618_p5, %p1612_p2 }
  0x2d   :  { %1622 = shalt.err (!%p1619_p6)
}
  0x2e   :  { %43 = dma.hbm_to_vmem [thread:$0]  %s2108_s2, 768, %s38_s28, [#allocation3], %s1722_s0, %s1722_s0, %s1723_s22  }
  0x2f   :  { %s1623_s21 = scalar_lea.hbm %s2111_s5, 512 }
  0x30   :  { %p1624_p7 = scmp.ne.s32.totalorder %s2111_s5, %s1623_s21  ;;  %p1627_p8 = scmp.lt.u32.totalorder %s1623_s21, %s2111_s5 }
  0x32   :  { %p1629_p9 = pnand %p1627_p8, %p1624_p7 }
  0x34   :  { %1632 = shalt.err (!%p1629_p9)
}
  0x35   :  { %s1633_s27 = scalar_lea.vmem %s1805_s30, 512  ;;  %p1638_p11 = scmp.lt.s32.totalorder %s1805_s30, %s1805_s30 }
  0x36   :  { %p1634_p10 = scmp.ne.s32.totalorder %s1805_s30, %s1633_s27  ;;  %p1639_p12 = scmp.lt.s32.totalorder %s1633_s27, %s1633_s27 }
  0x38   :  { %p1640_p13 = por %p1639_p12, %p1638_p11 }
  0x3a   :  { %p1641_p0 = pnand %p1640_p13, %p1634_p10 }
  0x3c   :  { %1644 = shalt.err (!%p1641_p0)
}
  0x3d   :  { %69 = dma.hbm_to_vmem [thread:$0]  %s2111_s5, 512, %s1805_s30, [#allocation8], %s1722_s0, %s1722_s0, %s1723_s22  }
  0x3e   :  { %1711 = dma.done.wait [#allocation5], 32  }
  0x3f   :  { %1712 = vsyncadd [#allocation5], 4294967264 }
  0x40   :  { %1713 = dma.done.wait [#allocation3], 768  }
  0x41   :  { %1714 = vsyncadd [#allocation3], 4294966528 }
  0x42   :  { %1715 = dma.done.wait [#allocation8], 1024  }
  0x43   :  { %1716 = vsyncadd [#allocation8], 4294966272 }
  0x44   :  { %84 = sfence }
  0x45   :  { %v85_v0 = vld [vmem:[#allocation7] sm:$0xff]  ;;  %v86_v1 = vld [vmem:[#allocation7 + $0x8] sm:$0xff]  ;;  %v87_v2 = vld [vmem:[#allocation7 + $0x10] sm:$0xff]  ;;  %v1727_v3 = vmov 0.0|0.0   ;;  %vm1728_vm0 = vmmov 0   ;;  %v1729_v6 = vmov 0.0  }
  0x46   :  { %1429 = vmatprep.subr.bf16.mxu0 %v1727_v3  ;;  %v1843_v4 = vpack.c.bf16 %v86_v1, %v85_v0  ;;  %v88_v5 = vld [vmem:[#allocation7 + $0x18] sm:$0xff]  ;;  %1338 = vmatprep.mubr.msk.f32.mxu0 %vm1728_vm0, %v1729_v6  ;;  %v1870_v8 = vld [vmem:[%s2107_s1] sm:$0x3]  ;;  %v1730_v9 = vmov 0   ;;  %s1251_s22 = sld [smem:[#allocation2 + $0x80]]  ;;  %vm100_vm2 = vcmask 1040384  }
  0x47   :  { %1435 = vmatprep.subr.bf16.mxu1 %v1727_v3  ;;  %1349 = vmatprep.mubr.msk.f32.mxu1 %vm1728_vm0, %v1729_v6  ;;  %v1851_v7 = vpack.c.bf16 %v88_v5, %v87_v2  ;;  %vm208_vm1 = vcmp.gt.s32.totalorder %v1870_v8, 0  ;;  %s91_s29 = sld [smem:[#allocation2]]  ;;  %v1880_v15 = vld [vmem:[%s2110_s4] ss:$0 sm:$0xff]  ;;  %s1731_s3 = smov 64   ;;  %vm102_vm4 = vcmask 261120  }
  0x48   :  { %1431 = vmatpush3.bf16.msra.mxu0 %v1843_v4  ;;  %1437 = vmatpush3.bf16.msra.mxu1 %v1843_v4  ;;  %v209_v10 = vsel %vm208_vm1, 1, %v1730_v9  ;;  %s1732_s4 = smov 32   ;;  %s1255_s13 = sld [smem:[#allocation2 + $0x81]]  ;;  %vm327_vm5 = vcmp.gt.s32.totalorder %v1870_v8, 1  ;;  %vm447_vm7 = vcmp.gt.s32.totalorder %v1870_v8, 2  ;;  %vm567_vm9 = vcmp.gt.s32.totalorder %v1870_v8, 3 }
  0x49   :  { %1432 = vmatprep.subr.bf16.mxu0 %v1727_v3  ;;  %1438 = vmatprep.subr.bf16.mxu1 %v1727_v3  ;;  %s1254_s14 = sld [smem:[#allocation2 + $0x1]]  ;;  %v328_v45 = vsel %vm327_vm5, 1, %v1730_v9  ;;  %s1259_s11 = sld [smem:[#allocation2 + $0x82]]  ;;  %vm687_vm11 = vcmp.gt.s32.totalorder %v1870_v8, 4  ;;  %vm807_vm13 = vcmp.gt.s32.totalorder %v1870_v8, 5  ;;  %vm927_vm15 = vcmp.gt.s32.totalorder %v1870_v8, 6 }
  0x4a   :  { %1499 = vset.pattern.permute.xlu1 %v1730_v9  ;;  %1500 = vset.pattern.permute.xlu0 %v1730_v9  ;;  %s1258_s17 = sld [smem:[#allocation2 + $0x2]]  ;;  %s1263_s20 = sld [smem:[#allocation2 + $0x83]]  ;;  %vm1047_vm1 = vcmp.gt.s32.totalorder %v1870_v8, 7  ;;  %vm1080_vm5 = vcmask 785408  }
  0x4b   :  { %211 = vperm.xlu1 %1499, %v209_v10   ;;  %s1262_s21 = sld [smem:[#allocation2 + $0x3]]  ;;  %s1267_s25 = sld [smem:[#allocation2 + $0x84]] }
  0x4c   :  { %1434 = vmatpush3.bf16.msra.mxu0 %v1851_v7  ;;  %1440 = vmatpush3.bf16.msra.mxu1 %v1851_v7  ;;  %s95_s30 = scalar_lea.vmem [#allocation6], %s1251_s22  ;;  %s1266_s26 = sld [smem:[#allocation2 + $0x4]] }
  0x4d   :  { %1441 = vmatprep.subr.bf16.mxu0 %v1727_v3  ;;  %1447 = vmatprep.subr.bf16.mxu1 %v1727_v3  ;;  %v96_v11 = vld [vmem:[%s95_s30] sm:$0x1]  ;;  %s92_s10 = scalar_lea.vmem [#allocation6], %s91_s29  ;;  %s1271_s28 = sld [smem:[#allocation2 + $0x85]] }
  0x4e   :  { %v98_v12 = vrot.slane %v96_v11, 7  ;;  %v93_v13 = vld [vmem:[%s92_s10] sm:$0x1]  ;;  %s220_s15 = scalar_lea.vmem [#allocation6], %s1255_s13  ;;  %s1270_s5 = sld [smem:[#allocation2 + $0x5]] }
  0x4f   :  { %1339 = vmatmul.mubr.f32.vlgmr.msra.gmra.mrb[0].mxu0 %v1729_v6  ;;  %v221_v36 = vld [vmem:[%s220_s15] sm:$0x1]  ;;  %s217_s16 = scalar_lea.vmem [#allocation6], %s1254_s14  ;;  %s340_s18 = scalar_lea.vmem [#allocation6], %s1259_s11 }
  0x50   :  { %1443 = vmatpush3.bf16.msra.mxu0 %v1843_v4  ;;  %1360 = vmatprep.mubr.msk.f32.mxu0 %vm1728_vm0, %v1729_v6  ;;  %v101_v14 = vsel %vm100_vm2, %v93_v13, %v98_v12  ;;  %v223_v37 = vrot.slane %v221_v36, 7  ;;  %v218_v38 = vld [vmem:[%s217_s16] sm:$0x1]  ;;  %s337_s19 = scalar_lea.vmem [#allocation6], %s1258_s17  ;;  %v448_v13 = vsel %vm447_vm7, 1, %v1730_v9  ;;  %s460_s23 = scalar_lea.vmem [#allocation6], %s1263_s20 }
  0x51   :  { %1444 = vmatprep.subr.bf16.mxu0 %v1727_v3  ;;  %v341_v62 = vld [vmem:[%s340_s18] sm:$0x1]  ;;  %s457_s24 = scalar_lea.vmem [#allocation6], %s1262_s21  ;;  %s580_s27 = scalar_lea.vmem [#allocation6], %s1267_s25 }
  0x52   :  { %v225_v39 = vsel %vm100_vm2, %v218_v38, %v223_v37  ;;  %v343_v63 = vrot.slane %v341_v62, 7  ;;  %v338_v0 = vld [vmem:[%s337_s19] sm:$0x1]  ;;  %s577_s2 = scalar_lea.vmem [#allocation6], %s1266_s26  ;;  %s1275_s29 = sld [smem:[#allocation2 + $0x86]] }
  0x53   :  { %v578_v62 = vld [vmem:[%s577_s2] sm:$0x1]  ;;  %s700_s0 = scalar_lea.vmem [#allocation6], %s1271_s28  ;;  %s1274_s30 = sld [smem:[#allocation2 + $0x6]] }
  0x54   :  { %1446 = vmatpush3.bf16.msra.mxu0 %v1851_v7  ;;  %v345_v1 = vsel %vm100_vm2, %v338_v0, %v343_v63  ;;  %s697_s22 = scalar_lea.vmem [#allocation6], %s1270_s5  ;;  %s1279_s12 = sld [smem:[#allocation2 + $0x87]] }
  0x55   :  { %1453 = vmatprep.subr.bf16.mxu0 %v1727_v3  ;;  %s1278_s13 = sld [smem:[#allocation2 + $0x7]]  ;;  %s1733_s16 = smov 96  }
  0x58   :  { %s820_s10 = scalar_lea.vmem [#allocation6], %s1275_s29 }
  0x59   :  { %s817_s1 = scalar_lea.vmem [#allocation6], %s1274_s30 }
  0x5a   :  { %s940_s14 = scalar_lea.vmem [#allocation6], %s1279_s12 }
  0x5b   :  { %s937_s15 = scalar_lea.vmem [#allocation6], %s1278_s13 }
  0xca   :  { %v212_v31 = vpop.permute.xlu1 %211 }
  0xcb   :  { %vm213_vm3 = vcmp.eq.s32.totalorder %v212_v31, 1  ;;  %v461_v31 = vld [vmem:[%s460_s23] sm:$0x1] }
 0x122   :  { %v172_v16 = vpop.f32.mrb[0].mxu0 }
 0x123   :  { %v176_v17 = vadd.f32 %v172_v16, %v101_v14  ;;  %v1340_v18 = vpop.f32.mrb[1].mxu0 }
 0x125   :  { %v183_v19 = vadd.f32 %v1880_v15, %v176_v17 }
 0x127   :  { %1501 = vtanh.f32 %v183_v19  ;;  %v1253_v21 = vmul.f32 -1.442695, %v183_v19 }
 0x129   :  { %1503 = vpow2.f32 %v1253_v21 }
 0x131   :  { %v1502_v20 = vpop.eup %1501 }
 0x132   :  { %193 = vrot.lane.b32.xlu0 %v1502_v20, %s1731_s3 }
 0x133   :  { %v1504_v22 = vpop.eup %1503 }
 0x134   :  { %v187_v23 = vadd.f32 1.0, %v1504_v22 }
 0x136   :  { %1505 = vrcp.f32 %v187_v23 }
 0x140   :  { %v1506_v24 = vpop.eup %1505 }
 0x141   :  { %v191_v27 = vmul.f32 0.0, %v1506_v24 }
 0x1a4   :  { %v194_v25 = vpop.permute.xlu0 %193 }
 0x1a5   :  { %v196_v26 = vmul.f32 %v1506_v24, %v194_v25 }
 0x1a7   :  { %198 = vrot.lane.b32.xlu0 %v196_v26, %s1732_s4 }
 0x219   :  { %v199_v28 = vpop.permute.xlu0 %198 }
 0x21a   :  { %v201_v29 = vadd.f32 %v199_v28, %v191_v27 }
 0x21c   :  { %1507 = vtanh.f32 %v201_v29  ;;  %v215_v52 = vsel %vm213_vm3, %v201_v29, 0.0 }
 0x226   :  { %v1508_v30 = vpop.eup %1507 }
 0x227   :  { %204 = vrot.lane.b32.xlu1 %v1508_v30, %s1731_s3 }
 0x299   :  { %v205_v32 = vpop.permute.xlu1 %204 }
 0x29a   :  { %v207_v33 = vmul.f32 %v1506_v24, %v205_v32  ;;  %v463_v32 = vrot.slane %v461_v31, 7  ;;  %v701_v31 = vld [vmem:[%s700_s0] sm:$0x1] }
 0x29c   :  { %v214_v34 = vsel %vm213_vm3, %v207_v33, 0.0  ;;  %v458_v33 = vld [vmem:[%s457_s24] sm:$0x1]  ;;  %vm1078_vm3 = vcmask 523264  }
 0x29d   :  { %227 = vrot.lane.b32.xlu0 %v214_v34, %s1732_s4 }
 0x30f   :  { %v1888_v35 = vpop.permute.xlu0 %227 }
 0x310   :  { %1350 = vmatmul.mubr.msk.f32.vlgmr.msra.gmra.mrb[0].mxu1 %vm102_vm4, %v1888_v35 }
 0x311   :  { %1449 = vmatpush3.bf16.msra.mxu1 %v1843_v4  ;;  %1371 = vmatprep.mubr.msk.f32.mxu1 %vm1728_vm0, %v1729_v6 }
 0x312   :  { %1450 = vmatprep.subr.bf16.mxu1 %v1727_v3 }
 0x315   :  { %1452 = vmatpush3.bf16.msra.mxu1 %v1851_v7 }
 0x316   :  { %1459 = vmatprep.subr.bf16.mxu1 %v1727_v3 }
 0x3e3   :  { %v297_v40 = vpop.f32.mrb[0].mxu1 }
 0x3e4   :  { %v301_v41 = vadd.f32 %v297_v40, %v225_v39  ;;  %v1351_v42 = vpop.f32.mrb[1].mxu1 }
 0x3e6   :  { %v302_v43 = vadd.f32 %v1880_v15, %v301_v41  ;;  %v568_v41 = vsel %vm567_vm9, 1, %v1730_v9 }
 0x3e8   :  { %1509 = vtanh.f32 %v302_v43  ;;  %v1257_v46 = vmul.f32 -1.442695, %v302_v43 }
 0x3ea   :  { %1511 = vpow2.f32 %v1257_v46 }
 0x3f2   :  { %v1510_v44 = vpop.eup %1509 }
 0x3f3   :  { %312 = vrot.lane.b32.xlu1 %v1510_v44, %s1731_s3 }
 0x3f4   :  { %v1512_v47 = vpop.eup %1511 }
 0x3f5   :  { %v306_v48 = vadd.f32 1.0, %v1512_v47 }
 0x3f7   :  { %330 = vperm.xlu1 %1499, %v328_v45   ;;  %1513 = vrcp.f32 %v306_v48 }
 0x401   :  { %v1514_v49 = vpop.eup %1513 }
 0x402   :  { %v310_v53 = vmul.f32 %v1514_v49, %v215_v52 }
 0x465   :  { %v313_v50 = vpop.permute.xlu1 %312 }
 0x466   :  { %v315_v51 = vmul.f32 %v1514_v49, %v313_v50 }
 0x468   :  { %317 = vrot.lane.b32.xlu0 %v315_v51, %s1732_s4 }
 0x476   :  { %v1906_v57 = vpop.permute.xlu1 %330 }
 0x477   :  { %vm332_vm6 = vcmp.eq.s32.totalorder %v1906_v57, 1 }
 0x4da   :  { %v318_v54 = vpop.permute.xlu0 %317 }
 0x4db   :  { %v320_v55 = vadd.f32 %v318_v54, %v310_v53 }
 0x4dd   :  { %1515 = vtanh.f32 %v320_v55  ;;  %v334_v21 = vsel %vm332_vm6, %v320_v55, %v215_v52 }
 0x4e7   :  { %v1516_v56 = vpop.eup %1515 }
 0x4e8   :  { %323 = vrot.lane.b32.xlu0 %v1516_v56, %s1731_s3 }
 0x55a   :  { %v324_v58 = vpop.permute.xlu0 %323 }
 0x55b   :  { %v1908_v59 = vmul.f32 %v1514_v49, %v324_v58 }
 0x55d   :  { %v333_v60 = vsel %vm332_vm6, %v1908_v59, %v214_v34  ;;  %v465_v34 = vsel %vm100_vm2, %v458_v33, %v463_v32  ;;  %v703_v32 = vrot.slane %v701_v31, 7  ;;  %v698_v33 = vld [vmem:[%s697_s22] sm:$0x1] }
 0x55e   :  { %347 = vrot.lane.b32.xlu1 %v333_v60, %s1732_s4 }
 0x5d0   :  { %v348_v61 = vpop.permute.xlu1 %347 }
 0x5d1   :  { %1361 = vmatmul.mubr.msk.f32.vlgmr.msra.gmra.mrb[2].mxu0 %vm102_vm4, %v348_v61 }
 0x5d2   :  { %1455 = vmatpush3.bf16.msra.mxu0 %v1843_v4  ;;  %1382 = vmatprep.mubr.msk.f32.mxu0 %vm1728_vm0, %v1729_v6 }
 0x5d3   :  { %1456 = vmatprep.subr.bf16.mxu0 %v1727_v3 }
 0x5d6   :  { %1458 = vmatpush3.bf16.msra.mxu0 %v1851_v7 }
 0x5d7   :  { %1465 = vmatprep.subr.bf16.mxu0 %v1727_v3 }
 0x6a4   :  { %v417_v2 = vpop.f32.mrb[2].mxu0 }
 0x6a5   :  { %v421_v5 = vadd.f32 %v417_v2, %v345_v1  ;;  %v1362_v10 = vpop.f32.mrb[3].mxu0 }
 0x6a7   :  { %v422_v11 = vadd.f32 %v1880_v15, %v421_v5 }
 0x6a9   :  { %1517 = vtanh.f32 %v422_v11  ;;  %v1261_v14 = vmul.f32 -1.442695, %v422_v11  ;;  %v688_v11 = vsel %vm687_vm11, 1, %v1730_v9 }
 0x6ab   :  { %1519 = vpow2.f32 %v1261_v14 }
 0x6b3   :  { %v1518_v12 = vpop.eup %1517 }
 0x6b4   :  { %432 = vrot.lane.b32.xlu0 %v1518_v12, %s1731_s3 }
 0x6b5   :  { %v1520_v16 = vpop.eup %1519 }
 0x6b6   :  { %v426_v17 = vadd.f32 1.0, %v1520_v16 }
 0x6b8   :  { %450 = vperm.xlu0 %1500, %v448_v13   ;;  %1521 = vrcp.f32 %v426_v17 }
 0x6c2   :  { %v1522_v18 = vpop.eup %1521 }
 0x6c3   :  { %v430_v22 = vmul.f32 %v1522_v18, %v334_v21 }
 0x726   :  { %v433_v19 = vpop.permute.xlu0 %432 }
 0x727   :  { %v435_v20 = vmul.f32 %v1522_v18, %v433_v19 }
 0x729   :  { %437 = vrot.lane.b32.xlu1 %v435_v20, %s1732_s4 }
 0x737   :  { %v1931_v26 = vpop.permute.xlu0 %450 }
 0x738   :  { %vm452_vm8 = vcmp.eq.s32.totalorder %v1931_v26, 1 }
 0x79b   :  { %v438_v23 = vpop.permute.xlu1 %437 }
 0x79c   :  { %v440_v24 = vadd.f32 %v438_v23, %v430_v22 }
 0x79e   :  { %1523 = vtanh.f32 %v440_v24  ;;  %v454_v48 = vsel %vm452_vm8, %v440_v24, %v334_v21 }
 0x7a8   :  { %v1524_v25 = vpop.eup %1523 }
 0x7a9   :  { %443 = vrot.lane.b32.xlu1 %v1524_v25, %s1731_s3 }
 0x81b   :  { %v444_v27 = vpop.permute.xlu1 %443 }
 0x81c   :  { %v1933_v28 = vmul.f32 %v1522_v18, %v444_v27 }
 0x81e   :  { %v453_v29 = vsel %vm452_vm8, %v1933_v28, %v333_v60  ;;  %v581_v60 = vld [vmem:[%s580_s27] sm:$0x1] }
 0x81f   :  { %467 = vrot.lane.b32.xlu1 %v453_v29, %s1732_s4  ;;  %v583_v61 = vrot.slane %v581_v60, 7  ;;  %v821_v60 = vld [vmem:[%s820_s10] sm:$0x1] }
 0x821   :  { %v585_v63 = vsel %vm100_vm2, %v578_v62, %v583_v61  ;;  %v823_v61 = vrot.slane %v821_v60, 7  ;;  %v818_v62 = vld [vmem:[%s817_s1] sm:$0x1]  ;;  %v1100_v60 = vld [vmem:[#allocation9 + $0x18] sm:$0xff] }
 0x891   :  { %v468_v30 = vpop.permute.xlu1 %467 }
 0x892   :  { %1372 = vmatmul.mubr.msk.f32.vlgmr.msra.gmra.mrb[2].mxu1 %vm102_vm4, %v468_v30 }
 0x893   :  { %1461 = vmatpush3.bf16.msra.mxu1 %v1843_v4  ;;  %1393 = vmatprep.mubr.msk.f32.mxu1 %vm1728_vm0, %v1729_v6 }
 0x894   :  { %1462 = vmatprep.subr.bf16.mxu1 %v1727_v3 }
 0x897   :  { %1464 = vmatpush3.bf16.msra.mxu1 %v1851_v7 }
 0x898   :  { %1471 = vmatprep.subr.bf16.mxu1 %v1727_v3 }
 0x965   :  { %v537_v36 = vpop.f32.mrb[2].mxu1 }
 0x966   :  { %v541_v37 = vadd.f32 %v537_v36, %v465_v34  ;;  %v1373_v38 = vpop.f32.mrb[3].mxu1  ;;  %v705_v34 = vsel %vm100_vm2, %v698_v33, %v703_v32  ;;  %v941_v32 = vld [vmem:[%s940_s14] sm:$0x1] }
 0x967   :  { %v943_v33 = vrot.slane %v941_v32, 7 }
 0x968   :  { %v542_v39 = vadd.f32 %v1880_v15, %v541_v37 }
 0x96a   :  { %1525 = vtanh.f32 %v542_v39  ;;  %v1265_v42 = vmul.f32 -1.442695, %v542_v39 }
 0x96c   :  { %1527 = vpow2.f32 %v1265_v42 }
 0x974   :  { %v1526_v40 = vpop.eup %1525 }
 0x975   :  { %552 = vrot.lane.b32.xlu0 %v1526_v40, %s1731_s3 }
 0x976   :  { %v1528_v43 = vpop.eup %1527 }
 0x977   :  { %v546_v44 = vadd.f32 1.0, %v1528_v43 }
 0x979   :  { %570 = vperm.xlu0 %1500, %v568_v41   ;;  %1529 = vrcp.f32 %v546_v44 }
 0x983   :  { %v1530_v45 = vpop.eup %1529 }
 0x984   :  { %v550_v49 = vmul.f32 %v1530_v45, %v454_v48 }
 0x9e7   :  { %v553_v46 = vpop.permute.xlu0 %552 }
 0x9e8   :  { %v555_v47 = vmul.f32 %v1530_v45, %v553_v46 }
 0x9ea   :  { %557 = vrot.lane.b32.xlu1 %v555_v47, %s1732_s4 }
 0x9f8   :  { %v1956_v53 = vpop.permute.xlu0 %570 }
 0x9f9   :  { %vm572_vm10 = vcmp.eq.s32.totalorder %v1956_v53, 1 }
 0xa5c   :  { %v558_v50 = vpop.permute.xlu1 %557 }
 0xa5d   :  { %v560_v51 = vadd.f32 %v558_v50, %v550_v49 }
 0xa5f   :  { %1531 = vtanh.f32 %v560_v51  ;;  %v574_v19 = vsel %vm572_vm10, %v560_v51, %v454_v48 }
 0xa69   :  { %v1532_v52 = vpop.eup %1531 }
 0xa6a   :  { %563 = vrot.lane.b32.xlu1 %v1532_v52, %s1731_s3 }
 0xadc   :  { %v564_v54 = vpop.permute.xlu1 %563 }
 0xadd   :  { %v1958_v55 = vmul.f32 %v1530_v45, %v564_v54 }
 0xadf   :  { %v573_v56 = vsel %vm572_vm10, %v1958_v55, %v453_v29 }
 0xae0   :  { %587 = vrot.lane.b32.xlu0 %v573_v56, %s1732_s4 }
 0xb52   :  { %v588_v58 = vpop.permute.xlu0 %587 }
 0xb53   :  { %1383 = vmatmul.mubr.msk.f32.vlgmr.msra.gmra.mrb[4].mxu0 %vm102_vm4, %v588_v58 }
 0xb54   :  { %1467 = vmatpush3.bf16.msra.mxu0 %v1843_v4  ;;  %1404 = vmatprep.mubr.msk.f32.mxu0 %vm1728_vm0, %v1729_v6 }
 0xb55   :  { %1468 = vmatprep.subr.bf16.mxu0 %v1727_v3 }
 0xb58   :  { %1470 = vmatpush3.bf16.msra.mxu0 %v1851_v7 }
 0xb59   :  { %1477 = vmatprep.subr.bf16.mxu0 %v1727_v3 }
 0xc26   :  { %v657_v0 = vpop.f32.mrb[4].mxu0 }
 0xc27   :  { %v661_v1 = vadd.f32 %v657_v0, %v585_v63  ;;  %v1384_v2 = vpop.f32.mrb[5].mxu0  ;;  %v825_v63 = vsel %vm100_vm2, %v818_v62, %v823_v61 }
 0xc29   :  { %v662_v5 = vadd.f32 %v1880_v15, %v661_v1 }
 0xc2b   :  { %1533 = vtanh.f32 %v662_v5  ;;  %v1269_v12 = vmul.f32 -1.442695, %v662_v5 }
 0xc2d   :  { %1535 = vpow2.f32 %v1269_v12 }
 0xc35   :  { %v1534_v10 = vpop.eup %1533 }
 0xc36   :  { %672 = vrot.lane.b32.xlu1 %v1534_v10, %s1731_s3 }
 0xc37   :  { %v1536_v13 = vpop.eup %1535 }
 0xc38   :  { %v666_v14 = vadd.f32 1.0, %v1536_v13 }
 0xc3a   :  { %690 = vperm.xlu1 %1499, %v688_v11   ;;  %1537 = vrcp.f32 %v666_v14 }
 0xc44   :  { %v1538_v16 = vpop.eup %1537 }
 0xc45   :  { %v670_v20 = vmul.f32 %v1538_v16, %v574_v19 }
 0xca8   :  { %v673_v17 = vpop.permute.xlu1 %672 }
 0xca9   :  { %v675_v18 = vmul.f32 %v1538_v16, %v673_v17 }
 0xcab   :  { %677 = vrot.lane.b32.xlu0 %v675_v18, %s1732_s4 }
 0xcb9   :  { %v1981_v24 = vpop.permute.xlu1 %690 }
 0xcba   :  { %vm692_vm12 = vcmp.eq.s32.totalorder %v1981_v24, 1 }
 0xd1d   :  { %v678_v21 = vpop.permute.xlu0 %677 }
 0xd1e   :  { %v680_v22 = vadd.f32 %v678_v21, %v670_v20 }
 0xd20   :  { %1539 = vtanh.f32 %v680_v22  ;;  %v694_v46 = vsel %vm692_vm12, %v680_v22, %v574_v19 }
 0xd2a   :  { %v1540_v23 = vpop.eup %1539 }
 0xd2b   :  { %683 = vrot.lane.b32.xlu0 %v1540_v23, %s1731_s3 }
 0xd9d   :  { %v684_v25 = vpop.permute.xlu0 %683 }
 0xd9e   :  { %v1983_v27 = vmul.f32 %v1538_v16, %v684_v25 }
 0xda0   :  { %v693_v29 = vsel %vm692_vm12, %v1983_v27, %v573_v56 }
 0xda1   :  { %707 = vrot.lane.b32.xlu1 %v693_v29, %s1732_s4 }
 0xe13   :  { %v708_v30 = vpop.permute.xlu1 %707 }
 0xe14   :  { %1394 = vmatmul.mubr.msk.f32.vlgmr.msra.gmra.mrb[4].mxu1 %vm102_vm4, %v708_v30 }
 0xe15   :  { %1473 = vmatpush3.bf16.msra.mxu1 %v1843_v4  ;;  %1415 = vmatprep.mubr.msk.f32.mxu1 %vm1728_vm0, %v1729_v6 }
 0xe16   :  { %1474 = vmatprep.subr.bf16.mxu1 %v1727_v3 }
 0xe19   :  { %1476 = vmatpush3.bf16.msra.mxu1 %v1851_v7  ;;  %v808_v7 = vsel %vm807_vm13, 1, %v1730_v9 }
 0xee7   :  { %v777_v36 = vpop.f32.mrb[4].mxu1 }
 0xee8   :  { %v781_v37 = vadd.f32 %v777_v36, %v705_v34  ;;  %v1395_v38 = vpop.f32.mrb[5].mxu1  ;;  %v938_v34 = vld [vmem:[%s937_s15] sm:$0x1] }
 0xee9   :  { %v945_v36 = vsel %vm100_vm2, %v938_v34, %v943_v33 }
 0xeea   :  { %v782_v4 = vadd.f32 %v1880_v15, %v781_v37 }
 0xeec   :  { %1541 = vtanh.f32 %v782_v4  ;;  %v1273_v40 = vmul.f32 -1.442695, %v782_v4 }
 0xeee   :  { %1543 = vpow2.f32 %v1273_v40  ;;  %v1048_v40 = vsel %vm1047_vm1, 1, %v1730_v9 }
 0xef6   :  { %v1542_v39 = vpop.eup %1541 }
 0xef7   :  { %792 = vrot.lane.b32.xlu0 %v1542_v39, %s1731_s3 }
 0xef8   :  { %v1544_v41 = vpop.eup %1543 }
 0xef9   :  { %v786_v42 = vadd.f32 1.0, %v1544_v41 }
 0xefb   :  { %810 = vperm.xlu0 %1500, %v808_v7   ;;  %1545 = vrcp.f32 %v786_v42 }
 0xf05   :  { %v1546_v43 = vpop.eup %1545 }
 0xf06   :  { %v790_v47 = vmul.f32 %v1546_v43, %v694_v46 }
 0xf69   :  { %v793_v44 = vpop.permute.xlu0 %792 }
 0xf6a   :  { %v795_v45 = vmul.f32 %v1546_v43, %v793_v44 }
 0xf6c   :  { %797 = vrot.lane.b32.xlu1 %v795_v45, %s1732_s4 }
 0xf7a   :  { %v2005_v51 = vpop.permute.xlu0 %810 }
 0xf7b   :  { %vm812_vm14 = vcmp.eq.s32.totalorder %v2005_v51, 1  ;;  %v455_v51 = vsel %vm452_vm8, %v1933_v28, 0.0 }
 0xfde   :  { %v798_v48 = vpop.permute.xlu1 %797 }
 0xfdf   :  { %v800_v49 = vadd.f32 %v798_v48, %v790_v47 }
 0xfe1   :  { %1547 = vtanh.f32 %v800_v49  ;;  %v814_v18 = vsel %vm812_vm14, %v800_v49, %v694_v46 }
 0xfeb   :  { %v1548_v50 = vpop.eup %1547 }
 0xfec   :  { %803 = vrot.lane.b32.xlu1 %v1548_v50, %s1731_s3  ;;  %v1098_v50 = vld [vmem:[#allocation9 + $0x8] sm:$0xff] }
0x105e   :  { %v804_v52 = vpop.permute.xlu1 %803 }
0x105f   :  { %v2007_v54 = vmul.f32 %v1546_v43, %v804_v52  ;;  %v1099_v52 = vld [vmem:[#allocation9 + $0x10] sm:$0xff] }
0x1060   :  { %v1481_v61 = vpack.c.bf16 %v1100_v60, %v1099_v52 }
0x1061   :  { %v813_v56 = vsel %vm812_vm14, %v2007_v54, %v693_v29  ;;  %v815_v62 = vsel %vm812_vm14, %v2007_v54, 0.0 }
0x1062   :  { %827 = vrot.lane.b32.xlu0 %v813_v56, %s1732_s4 }
0x10d4   :  { %v828_v58 = vpop.permute.xlu0 %827 }
0x10d5   :  { %1405 = vmatmul.mubr.msk.f32.vlgmr.msra.gmra.mrb[6].mxu0 %vm102_vm4, %v828_v58 }
0x10d6   :  { %1426 = vmatprep.mubr.msk.f32.mxu0 %vm1728_vm0, %v1729_v6  ;;  %v928_v6 = vsel %vm927_vm15, 1, %v1730_v9  ;;  %v1097_v9 = vld [vmem:[#allocation9] sm:$0xff] }
0x10d7   :  { %v1478_v58 = vpack.c.bf16 %v1098_v50, %v1097_v9 }
0x10d9   :  { %1479 = vmatpush3.bf16.msra.mxu0 %v1478_v58 }
0x10da   :  { %1480 = vmatprep.subr.bf16.mxu0 %v1727_v3  ;;  %v695_v3 = vsel %vm692_vm12, %v1983_v27, 0.0 }
0x10dd   :  { %1482 = vmatpush3.bf16.msra.mxu0 %v1481_v61 }
0x11a8   :  { %v897_v0 = vpop.f32.mrb[6].mxu0 }
0x11a9   :  { %v901_v1 = vadd.f32 %v897_v0, %v825_v63  ;;  %v1406_v2 = vpop.f32.mrb[7].mxu0 }
0x11ab   :  { %v902_v5 = vadd.f32 %v1880_v15, %v901_v1 }
0x11ad   :  { %1549 = vtanh.f32 %v902_v5  ;;  %v1277_v11 = vmul.f32 -1.442695, %v902_v5 }
0x11af   :  { %1551 = vpow2.f32 %v1277_v11 }
0x11b7   :  { %v1550_v10 = vpop.eup %1549 }
0x11b8   :  { %912 = vrot.lane.b32.xlu1 %v1550_v10, %s1731_s3 }
0x11b9   :  { %v1552_v12 = vpop.eup %1551 }
0x11ba   :  { %v906_v13 = vadd.f32 1.0, %v1552_v12  ;;  %v575_v12 = vsel %vm572_vm10, %v1958_v55, 0.0 }
0x11bc   :  { %930 = vperm.xlu1 %1499, %v928_v6   ;;  %1553 = vrcp.f32 %v906_v13 }
0x11c6   :  { %v1554_v14 = vpop.eup %1553 }
0x11c7   :  { %v910_v19 = vmul.f32 %v1554_v14, %v814_v18 }
0x122a   :  { %v913_v16 = vpop.permute.xlu1 %912 }
0x122b   :  { %v915_v17 = vmul.f32 %v1554_v14, %v913_v16 }
0x122d   :  { %917 = vrot.lane.b32.xlu0 %v915_v17, %s1732_s4 }
0x123b   :  { %v931_v23 = vpop.permute.xlu1 %930 }
0x123c   :  { %vm932_vm0 = vcmp.eq.s32.totalorder %v931_v23, 1 }
0x129f   :  { %v918_v20 = vpop.permute.xlu0 %917 }
0x12a0   :  { %v920_v21 = vadd.f32 %v918_v20, %v910_v19 }
0x12a2   :  { %1555 = vtanh.f32 %v920_v21 }
0x12ac   :  { %v1556_v22 = vpop.eup %1555 }
0x12ad   :  { %923 = vrot.lane.b32.xlu0 %v1556_v22, %s1731_s3 }
0x131f   :  { %v924_v25 = vpop.permute.xlu0 %923 }
0x1320   :  { %v926_v29 = vmul.f32 %v1554_v14, %v924_v25 }
0x1322   :  { %v933_v30 = vsel %vm932_vm0, %v926_v29, %v813_v56  ;;  %v335_v56 = vsel %vm332_vm6, %v1908_v59, 0.0  ;;  %v935_v63 = vsel %vm932_vm0, %v926_v29, 0.0  ;;  %vm1184_vm6 = vcmask 254976  }
0x1323   :  { %947 = vrot.lane.b32.xlu1 %v933_v30, %s1732_s4 }
0x1395   :  { %v948_v31 = vpop.permute.xlu1 %947 }
0x1396   :  { %1416 = vmatmul.mubr.msk.f32.vlgmr.msra.gmra.mrb[6].mxu1 %vm102_vm4, %v948_v31 }
0x1469   :  { %v1017_v37 = vpop.f32.mrb[6].mxu1 }
0x146a   :  { %v1021_v38 = vadd.f32 %v1017_v37, %v945_v36  ;;  %v1417_v4 = vpop.f32.mrb[7].mxu1 }
0x146c   :  { %v1022_v39 = vadd.f32 %v1880_v15, %v1021_v38  ;;  %v934_v15 = vsel %vm932_vm0, %v920_v21, %v814_v18 }
0x146e   :  { %1557 = vtanh.f32 %v1022_v39  ;;  %v1281_v41 = vmul.f32 -1.442695, %v1022_v39 }
0x1470   :  { %1559 = vpow2.f32 %v1281_v41 }
0x1478   :  { %v1558_v7 = vpop.eup %1557 }
0x1479   :  { %1032 = vrot.lane.b32.xlu0 %v1558_v7, %s1731_s3 }
0x147a   :  { %v1560_v42 = vpop.eup %1559 }
0x147b   :  { %v1026_v43 = vadd.f32 1.0, %v1560_v42 }
0x147d   :  { %1050 = vperm.xlu0 %1500, %v1048_v40   ;;  %1561 = vrcp.f32 %v1026_v43 }
0x1487   :  { %v1562_v44 = vpop.eup %1561 }
0x1488   :  { %v1030_v47 = vmul.f32 %v1562_v44, %v934_v15 }
0x14eb   :  { %v1033_v45 = vpop.permute.xlu0 %1032 }
0x14ec   :  { %v1035_v46 = vmul.f32 %v1562_v44, %v1033_v45 }
0x14ee   :  { %1037 = vrot.lane.b32.xlu1 %v1035_v46, %s1732_s4 }
0x14fc   :  { %v1051_v57 = vpop.permute.xlu0 %1050 }
0x14fd   :  { %vm1052_vm2 = vcmp.eq.s32.totalorder %v1051_v57, 1 }
0x1560   :  { %v1038_v8 = vpop.permute.xlu1 %1037 }
0x1561   :  { %v1040_v48 = vadd.f32 %v1038_v8, %v1030_v47 }
0x1563   :  { %1563 = vtanh.f32 %v1040_v48  ;;  %v1054_v54 = vsel %vm1052_vm2, %v1040_v48, %v934_v15 }
0x156d   :  { %v1564_v49 = vpop.eup %1563 }
0x156e   :  { %1043 = vrot.lane.b32.xlu1 %v1564_v49, %s1731_s3 }
0x1572   :  { %1058 = vrot.lane.b32.xlu1 %v335_v56, %s1731_s3 }
0x1576   :  { %1070 = vrot.lane.b32.xlu1 %v815_v62, %s1731_s3  ;;  %s1734_s3 = smov [#allocation10]  }
0x157a   :  { %1074 = vrot.lane.b32.xlu1 %v935_v63, %s1733_s16 }
0x15e0   :  { %v1044_v59 = vpop.permute.xlu1 %1043 }
0x15e1   :  { %v1046_v0 = vmul.f32 %v1562_v44, %v1044_v59 }
0x15e3   :  { %v1053_v1 = vsel %vm1052_vm2, %v1046_v0, %v933_v30  ;;  %v1055_v13 = vsel %vm1052_vm2, %v1046_v0, 0.0 }
0x15e4   :  { %1109 = vrot.lane.b32.xlu0 %v1053_v1, %s1732_s4  ;;  %v1059_v2 = vpop.permute.xlu1 %1058 }
0x15e5   :  { %v1077_v26 = vsel %vm102_vm4, %v1888_v35, %v1059_v2 }
0x15e8   :  { %1066 = vrot.lane.b32.xlu0 %v695_v3, %s1732_s4  ;;  %v1071_v5 = vpop.permute.xlu1 %1070  ;;  %s1197_s4 = sshll.u32 %s1734_s3, 4  ;;  %s1198_s4 = int_to_ptr.vmem [resolvable:$true] %s1197_s4 }
0x15e9   :  { %s1645_s11 = scalar_lea.vmem %s1198_s4, 64  ;;  %p1650_p2 = scmp.lt.s32.totalorder %s1198_s4, %s1198_s4 }
0x15ea   :  { %p1646_p1 = scmp.ne.s32.totalorder %s1198_s4, %s1645_s11  ;;  %p1651_p3 = scmp.lt.s32.totalorder %s1645_s11, %s1645_s11 }
0x15ec   :  { %1062 = vrot.lane.b32.xlu0 %v455_v51, %s1733_s16  ;;  %v1075_v27 = vpop.permute.xlu1 %1074  ;;  %p1652_p4 = por %p1651_p3, %p1650_p2 }
0x15ee   :  { %p1653_p5 = pnand %p1652_p4, %p1646_p1 }
0x15f0   :  { %1187 = vrot.lane.b32.xlu0 %v1054_v54, %s1733_s16 }
0x1656   :  { %v1110_v10 = vpop.permute.xlu0 %1109 }
0x1657   :  { %1427 = vmatmul.mubr.msk.f32.vlgmr.msra.gmra.mrb[8].mxu0 %vm102_vm4, %v1110_v10 }
0x165a   :  { %v1067_v6 = vpop.permute.xlu0 %1066 }
0x165b   :  { %v1082_v24 = vsel %vm102_vm4, %v1067_v6, %v1071_v5 }
0x165c   :  { %v1083_v11 = vsel %vm1078_vm3, %v1082_v24, %v1075_v27 }
0x165d   :  { %v1084_v17 = vsel %vm1080_vm5, %v1083_v11, %v1055_v13 }
0x165e   :  { %v1063_v28 = vpop.permute.xlu0 %1062 }
0x165f   :  { %v1079_v14 = vsel %vm1078_vm3, %v1077_v26, %v1063_v28 }
0x1660   :  { %v1081_v16 = vsel %vm1080_vm5, %v1079_v14, %v575_v12 }
0x1661   :  { %v1087_v18 = vcombine.low %v1081_v16, %v1084_v17 }
0x1662   :  { %v1188_v19 = vpop.permute.xlu0 %1187 }
0x1663   :  { %1190 = vst.msk [vmem:[#allocation13] sm:$0x3] %vm1184_vm6, %v1188_v19  ;;  %1282 = vst.sshfl [vmem:[#allocation10] sm:$0x33 pattern:$0x76325410] %v1087_v18 }
0x1664   :  { %1656 = shalt.err (!%p1653_p5)
}
0x1665   :  { %s1657_s19 = scalar_lea.hbm %s2113_s7, 64 }
0x1666   :  { %p1658_p6 = scmp.ne.s32.totalorder %s2113_s7, %s1657_s19  ;;  %p1661_p7 = scmp.lt.u32.totalorder %s1657_s19, %s2113_s7 }
0x1668   :  { %p1663_p8 = pnand %p1661_p7, %p1658_p6 }
0x166a   :  { %1666 = shalt.err (!%p1663_p8)
}
0x166b   :  { %1200 = dma.vmem_to_hbm [thread:$0]  %s1198_s4, 64, %s2113_s7, [#allocation4]   ;;  %v1283_v35 = vld [vmem:[%s2112_s6] ss:$0 sm:$0xff] }
0x166c   :  { %s1735_s28 = smov [#allocation11]   ;;  %s1736_s0 = smov [#allocation13]  }
0x166d   :  { %s1207_s5 = sshll.u32 %s1735_s28, 4  ;;  %s1217_s22 = sshll.u32 %s1736_s0, 4  ;;  %s1208_s5 = int_to_ptr.vmem [resolvable:$true] %s1207_s5  ;;  %s1218_s22 = int_to_ptr.vmem [resolvable:$true] %s1217_s22 }
0x166e   :  { %s1667_s29 = scalar_lea.vmem %s1208_s5, 32  ;;  %p1672_p10 = scmp.lt.s32.totalorder %s1208_s5, %s1208_s5 }
0x166f   :  { %p1668_p9 = scmp.ne.s32.totalorder %s1208_s5, %s1667_s29  ;;  %p1673_p11 = scmp.lt.s32.totalorder %s1667_s29, %s1667_s29 }
0x1671   :  { %p1674_p12 = por %p1673_p11, %p1672_p10 }
0x1673   :  { %p1675_p13 = pnand %p1674_p12, %p1668_p9 }
0x172a   :  { %v1179_v53 = vpop.f32.mrb[8].mxu0 }
0x172b   :  { %v1180_v55 = vadd.f32 %v1283_v35, %v1179_v53  ;;  %v1428_v20 = vpop.f32.mrb[9].mxu0 }
0x172d   :  { %1565 = vtanh.f32 %v1180_v55 }
0x1737   :  { %v1566_v21 = vpop.eup %1565 }
0x1738   :  { %1185 = vst.msk [vmem:[#allocation11] sm:$0x3] %vm1184_vm6, %v1566_v21 }
0x1739   :  { %1678 = shalt.err (!%p1675_p13)
}
0x173a   :  { %s1679_s30 = scalar_lea.hbm %s2114_s8, 32 }
0x173b   :  { %p1680_p0 = scmp.ne.s32.totalorder %s2114_s8, %s1679_s30  ;;  %p1683_p1 = scmp.lt.u32.totalorder %s1679_s30, %s2114_s8 }
0x173d   :  { %p1685_p2 = pnand %p1683_p1, %p1680_p0 }
0x173f   :  { %1688 = shalt.err (!%p1685_p2)
}
0x1740   :  { %1210 = dma.vmem_to_hbm [thread:$0]  %s1208_s5, 32, %s2114_s8, [#allocation12]  }
0x1741   :  { %s1689_s16 = scalar_lea.vmem %s1218_s22, 32  ;;  %p1694_p4 = scmp.lt.s32.totalorder %s1218_s22, %s1218_s22 }
0x1742   :  { %p1690_p3 = scmp.ne.s32.totalorder %s1218_s22, %s1689_s16  ;;  %p1695_p5 = scmp.lt.s32.totalorder %s1689_s16, %s1689_s16 }
0x1744   :  { %p1696_p6 = por %p1695_p5, %p1694_p4 }
0x1746   :  { %p1697_p7 = pnand %p1696_p6, %p1690_p3 }
0x1748   :  { %1700 = shalt.err (!%p1697_p7)
}
0x1749   :  { %s1701_s11 = scalar_lea.hbm %s2115_s9, 32 }
0x174a   :  { %p1702_p8 = scmp.ne.s32.totalorder %s2115_s9, %s1701_s11  ;;  %p1705_p9 = scmp.lt.u32.totalorder %s1701_s11, %s2115_s9 }
0x174c   :  { %p1707_p10 = pnand %p1705_p9, %p1702_p8 }
0x174e   :  { %1710 = shalt.err (!%p1707_p10)
}
0x174f   :  { %1220 = dma.vmem_to_hbm [thread:$0]  %s1218_s22, 32, %s2115_s9, [#allocation12]  }
0x1750   :  { %1717 = dma.done.wait [#allocation4], 64  }
0x1751   :  { %1718 = vsyncadd [#allocation4], 4294967232 }
0x1752   :  { %1719 = dma.done.wait [#allocation12], 64  }
0x1753   :  { %1720 = vsyncadd [#allocation12], 4294967232 }
0x1754   :  { %1230 = vsyncpa [#allocation3], 1 }
0x1755   :  { %1231 = vsyncpa [#allocation8], 1 }
0x1756   :  { %1232 = vsyncpa [#allocation4], 1 }
0x1757   :  { %1233 = vsyncpa [#allocation12], 1 }
0x1758   :  { %1234 = vsyncpa [#allocation5], 1 }

</bundles_post_ra>
